<compile_context>
chip_gen: v7x
topology: tpu7x:2x2x1
jax: 0.10.0
libtpu: 0.0.40
codegen_flags: <defaults>
</compile_context>

<pallas_src>
import jax
import jax.numpy as jnp
from jax.experimental import pallas as pl
from jax.experimental.pallas import tpu as pltpu


def _round_up(x, m):
    return ((x + m - 1) // m) * m


def _sigmoid_kernel(z):
    # exp (EUP) + approximate reciprocal (EUP) -- keeps the divide off the VPU.
    return pl.reciprocal(1.0 + jnp.exp(-z), approx=True)


def lstm_kernel(xemb_ref, wih_ref, whh_ref, bg_ref,
                fc1w_ref, fc1b_ref, fc2w_ref, fc2b_ref,
                out_ref, gx_ref):
    """Single-invocation kernel: whole recurrence + classifier head.

    xemb_ref : (S*Bp, D)    bf16  embedded tokens, time-major then batch
    wih_ref  : (D, 4*Mg)    bf16  W_ih^T, per-gate blocks lane-padded M->Mg
    whh_ref  : (Mg, 4*Mg)   bf16  W_hh^T, rows and per-gate blocks padded
    bg_ref   : (1, 4*Mg)    f32   b_ih + b_hh, per-gate blocks padded
    fc1w_ref : (Mg, Hp)     bf16 ; fc1b_ref: (1, Hp) f32
    fc2w_ref : (Hp, Cp)     bf16 ; fc2b_ref: (1, Cp) f32
    out_ref  : (Bp, Cp)     f32
    gx_ref   : (S*Bp, 4*Mg) f32 VMEM scratch -- precomputed input-projection gates.
    """
    f32 = jnp.float32
    bf16 = jnp.bfloat16

    SB = xemb_ref.shape[0]
    Mg = whh_ref.shape[0]
    Bp = out_ref.shape[0]
    S = SB // Bp

    # --- Pre-loop: input projection (+ bias) for ALL time steps in one MXU pass. ---
    gx_ref[...] = (jnp.dot(xemb_ref[...], wih_ref[...], preferred_element_type=f32)
                   + bg_ref[...])

    # --- Serial recurrence: only h @ W_hh^T + gates_x[t] + elementwise per step. ---
    def step(t, carry):
        h, c = carry
        row = pl.multiple_of(t * Bp, Bp)                     # sublane-aligned dynamic slice
        gates = (gx_ref[pl.ds(row, Bp), :]
                 + jnp.dot(h.astype(bf16), whh_ref[...], preferred_element_type=f32))
        i_g = _sigmoid_kernel(gates[:, 0 * Mg:1 * Mg])       # 128-lane aligned gate slices
        f_g = _sigmoid_kernel(gates[:, 1 * Mg:2 * Mg])
        g_g = jnp.tanh(gates[:, 2 * Mg:3 * Mg])
        o_g = _sigmoid_kernel(gates[:, 3 * Mg:4 * Mg])
        c_new = f_g * c + i_g * g_g
        h_new = o_g * jnp.tanh(c_new)
        return h_new, c_new

    h0 = jnp.zeros((Bp, Mg), f32)
    c0 = jnp.zeros((Bp, Mg), f32)
    h_n, _ = jax.lax.fori_loop(0, S, step, (h0, c0),
                               unroll=True if S <= 16 else 4)

    # --- Classifier head on h_n: fc1 -> ReLU -> fc2. ---
    z = (jnp.dot(h_n.astype(bf16), fc1w_ref[...], preferred_element_type=f32)
         + fc1b_ref[...])
    z = jnp.maximum(z, 0.0)
    out = (jnp.dot(z.astype(bf16), fc2w_ref[...], preferred_element_type=f32)
           + fc2b_ref[...])
    out_ref[...] = out.astype(out_ref.dtype)


def _pad_gate_blocks(w, M, Mg):
    """(rows, 4*M) -> (rows, 4*Mg): each torch gate block (i,f,g,o) zero-padded to Mg lanes."""
    if Mg == M:
        return w
    rows = w.shape[0]
    out = jnp.zeros((rows, 4 * Mg), w.dtype)
    for k in range(4):
        out = out.at[:, k * Mg:k * Mg + M].set(w[:, k * M:(k + 1) * M])
    return out


def lstm_forward(x, emb, w_ih, w_hh, b_ih, b_hh, fc1_w, fc1_b, fc2_w, fc2_b):
    """Forward pass matching the PyTorch module.

    x     : (B, S) int32 token ids
    emb   : (V, D)            torch nn.Embedding weight
    w_ih  : (4M, D), w_hh: (4M, M), b_ih/b_hh: (4M,)   torch nn.LSTM params (layer 0)
    fc1_w : (H, M),  fc1_b: (H,)
    fc2_w : (C, H),  fc2_b: (C,)
    returns (B, C) float32 (size-1 dims squeezed, mirroring torch .squeeze()).
    """
    B, S = x.shape
    V, D = emb.shape
    M = w_hh.shape[1]
    H = fc1_w.shape[0]
    C = fc2_w.shape[0]

    f32, bf16 = jnp.float32, jnp.bfloat16

    Bp = _round_up(B, 8)       # sublane-aligned batch
    Cp = _round_up(C, 128)     # lane-dense output store
    Mg = _round_up(M, 128)     # lane-aligned per-gate width
    Hp = _round_up(H, 128)

    # Embedding lookup in the wrapper (XLA gather): the (V, D) table never enters VMEM.
    x_emb = jnp.take(emb.astype(f32), x.astype(jnp.int32), axis=0)      # (B, S, D)
    x_emb = jnp.swapaxes(x_emb, 0, 1)                                   # (S, B, D) time-major
    x_flat = (jnp.zeros((S, Bp, D), bf16)
              .at[:, :B, :].set(x_emb.astype(bf16))
              .reshape(S * Bp, D))

    # Gate weights, torch order (i,f,g,o), each gate lane-padded M -> Mg.
    wih_t = _pad_gate_blocks(w_ih.T.astype(f32), M, Mg).astype(bf16)             # (D, 4Mg)
    whh_t = (jnp.zeros((Mg, 4 * Mg), f32)
             .at[:M, :].set(_pad_gate_blocks(w_hh.T.astype(f32), M, Mg))
             .astype(bf16))                                                       # (Mg, 4Mg)
    bg = _pad_gate_blocks((b_ih + b_hh).astype(f32).reshape(1, 4 * M), M, Mg)     # (1, 4Mg) f32

    fc1_wt = (jnp.zeros((Mg, Hp), f32).at[:M, :H].set(fc1_w.T.astype(f32))).astype(bf16)
    fc1_b2 = jnp.zeros((1, Hp), f32).at[:, :H].set(fc1_b.astype(f32).reshape(1, H))
    fc2_wt = (jnp.zeros((Hp, Cp), f32).at[:H, :C].set(fc2_w.T.astype(f32))).astype(bf16)
    fc2_b2 = jnp.zeros((1, Cp), f32).at[:, :C].set(fc2_b.astype(f32).reshape(1, C))

    flops = int(2 * S * Bp * D * 4 * Mg
                + S * (2 * Bp * Mg * 4 * Mg + 10 * Bp * Mg)
                + 2 * Bp * Mg * Hp + 2 * Bp * Hp * Cp)
    transcendentals = int(S * Bp * 5 * Mg)
    bytes_accessed = int(2 * S * Bp * D + 2 * D * 4 * Mg + 2 * Mg * 4 * Mg + 4 * 4 * Mg
                         + 2 * Mg * Hp + 4 * Hp + 2 * Hp * Cp + 4 * Cp + 4 * Bp * Cp)

    vmem = pltpu.MemorySpace.VMEM
    out = pl.pallas_call(
        lstm_kernel,
        out_shape=jax.ShapeDtypeStruct((Bp, Cp), jnp.float32),
        in_specs=[pl.BlockSpec(memory_space=vmem)] * 8,     # full-array blocks, single invocation
        out_specs=pl.BlockSpec(memory_space=vmem),
        scratch_shapes=[pltpu.VMEM((S * Bp, 4 * Mg), jnp.float32)],
        compiler_params=pltpu.CompilerParams(vmem_limit_bytes=32 * 1024 * 1024),
        cost_estimate=pl.CostEstimate(flops=flops, transcendentals=transcendentals,
                                      bytes_accessed=bytes_accessed),
    )(x_flat, wih_t, whh_t, bg, fc1_wt, fc1_b2, fc2_wt, fc2_b2)

    out = out[:B, :C]
    # torch .squeeze(): drop size-1 dims only.
    if C == 1:
        out = out[:, 0]
    if B == 1:
        out = out[0]
    return out


def lstm_ref(x, emb, w_ih, w_hh, b_ih, b_hh, fc1_w, fc1_b, fc2_w, fc2_b):
    """Pure-JAX f32 reference with identical semantics (for the correctness assert)."""
    def sig(z):
        return 1.0 / (1.0 + jnp.exp(-z))

    xe = jnp.take(emb, x, axis=0)                        # (B, S, D)
    B, S, _ = xe.shape
    M = w_hh.shape[1]

    def step(carry, xt):
        h, c = carry
        gates = xt @ w_ih.T + h @ w_hh.T + b_ih + b_hh
        i = sig(gates[:, 0 * M:1 * M])
        f = sig(gates[:, 1 * M:2 * M])
        g = jnp.tanh(gates[:, 2 * M:3 * M])
        o = sig(gates[:, 3 * M:4 * M])
        c = f * c + i * g
        h = o * jnp.tanh(c)
        return (h, c), None

    h0 = jnp.zeros((B, M), jnp.float32)
    c0 = jnp.zeros((B, M), jnp.float32)
    (hn, _), _ = jax.lax.scan(step, (h0, c0), jnp.swapaxes(xe, 0, 1))
    z = jnp.maximum(hn @ fc1_w.T + fc1_b, 0.0)
    return z @ fc2_w.T + fc2_b


if __name__ == "__main__":
    # Small deterministic setup consistent with the module:
    #   num_words=32, dim_embedding=32, memory_size=32, num_classes=4, hidden_size=1024 (fixed in spec)
    #   batch=2, seq=8
    num_words, dim_embedding, memory_size, num_classes = 32, 32, 32, 4
    hidden_size = 1024
    batch, seq = 2, 8

    key = jax.random.PRNGKey(0)
    ks = jax.random.split(key, 10)

    k_lstm = 1.0 / jnp.sqrt(memory_size)
    emb = jax.random.normal(ks[0], (num_words, dim_embedding), dtype=jnp.float32)
    w_ih = jax.random.uniform(ks[1], (4 * memory_size, dim_embedding), jnp.float32, -k_lstm, k_lstm)
    w_hh = jax.random.uniform(ks[2], (4 * memory_size, memory_size), jnp.float32, -k_lstm, k_lstm)
    b_ih = jax.random.uniform(ks[3], (4 * memory_size,), jnp.float32, -k_lstm, k_lstm)
    b_hh = jax.random.uniform(ks[4], (4 * memory_size,), jnp.float32, -k_lstm, k_lstm)

    k_fc1 = 1.0 / jnp.sqrt(memory_size)
    fc1_w = jax.random.uniform(ks[5], (hidden_size, memory_size), jnp.float32, -k_fc1, k_fc1)
    fc1_b = jax.random.uniform(ks[6], (hidden_size,), jnp.float32, -k_fc1, k_fc1)

    k_fc2 = 1.0 / jnp.sqrt(hidden_size)
    fc2_w = jax.random.uniform(ks[7], (num_classes, hidden_size), jnp.float32, -k_fc2, k_fc2)
    fc2_b = jax.random.uniform(ks[8], (num_classes,), jnp.float32, -k_fc2, k_fc2)

    x = jax.random.randint(ks[9], (batch, seq), 0, num_words, dtype=jnp.int32)

    out = lstm_forward(x, emb, w_ih, w_hh, b_ih, b_hh, fc1_w, fc1_b, fc2_w, fc2_b)
    out = jax.block_until_ready(out)

    ref = lstm_ref(x, emb, w_ih, w_hh, b_ih, b_hh, fc1_w, fc1_b, fc2_w, fc2_b)
    assert out.shape == (batch, num_classes), out.shape
    # bf16 MXU inputs (with f32 accumulation) vs. a pure-f32 reference => relaxed tolerance.
    assert jnp.allclose(out, ref, atol=2e-2, rtol=2e-2), (out, ref)

    print("KERNEL_OK")
</pallas_src>

<mosaic_0001>
module attributes {stable_mosaic.version = 11 : i64} {
  func.func @lstm_kernel(%arg0: memref<64x32xbf16, #tpu.memory_space<vmem>>, %arg1: memref<32x512xbf16, #tpu.memory_space<vmem>>, %arg2: memref<128x512xbf16, #tpu.memory_space<vmem>>, %arg3: memref<1x512xf32, #tpu.memory_space<vmem>>, %arg4: memref<128x1024xbf16, #tpu.memory_space<vmem>>, %arg5: memref<1x1024xf32, #tpu.memory_space<vmem>>, %arg6: memref<1024x128xbf16, #tpu.memory_space<vmem>>, %arg7: memref<1x128xf32, #tpu.memory_space<vmem>>, %arg8: memref<8x128xf32, #tpu.memory_space<vmem>>, %arg9: memref<64x512xf32, #tpu.memory_space<vmem>>) attributes {dimension_semantics = [], scalar_prefetch = 0 : i64, scratch_operands = 1 : i64, tpu.core_type = #tpu.core_type<tc>} {
    %c0 = arith.constant 0 : index
    %c0_0 = arith.constant 0 : index
    %0 = vector.load %arg0[%c0, %c0_0] : memref<64x32xbf16, #tpu.memory_space<vmem>>, vector<64x32xbf16>
    %c0_1 = arith.constant 0 : index
    %c0_2 = arith.constant 0 : index
    %1 = vector.load %arg1[%c0_1, %c0_2] : memref<32x512xbf16, #tpu.memory_space<vmem>>, vector<32x512xbf16>
    %cst = arith.constant dense<0.000000e+00> : vector<64x512xf32>
    %2 = tpu.matmul %0, %1, %cst {dimension_numbers = #tpu.dot_dimension_numbers<[1], [0], [0], [1], [0, 0, 1, 1], [], []>} : vector<64x32xbf16>, vector<32x512xbf16>, vector<64x512xf32> -> vector<64x512xf32>
    %c0_3 = arith.constant 0 : index
    %c0_4 = arith.constant 0 : index
    %3 = vector.load %arg3[%c0_3, %c0_4] : memref<1x512xf32, #tpu.memory_space<vmem>>, vector<1x512xf32>
    %4 = vector.broadcast %3 : vector<1x512xf32> to vector<64x512xf32>
    %5 = arith.addf %2, %4 : vector<64x512xf32>
    %c0_5 = arith.constant 0 : index
    %c0_6 = arith.constant 0 : index
    %6 = vector.load %arg9[%c0_5, %c0_6] : memref<64x512xf32, #tpu.memory_space<vmem>>, vector<64x512xf32>
    tpu.vector_store %arg9[%c0_5, %c0_6], %5 {strides = array<i32>} : memref<64x512xf32, #tpu.memory_space<vmem>>, vector<64x512xf32>,
    %cst_7 = arith.constant 0.000000e+00 : f32
    %7 = vector.broadcast %cst_7 : f32 to vector<8x128xf32>
    %cst_8 = arith.constant 0.000000e+00 : f32
    %8 = vector.broadcast %cst_8 : f32 to vector<8x128xf32>
    %c0_i32 = arith.constant 0 : i32
    %c8_i32 = arith.constant 8 : i32
    %9 = arith.muli %c0_i32, %c8_i32 : i32
    %10 = tpu.assume_multiple %9, 8 : i32
    %11 = arith.index_cast %10 : i32 to index
    %c0_9 = arith.constant 0 : index
    %12 = vector.load %arg9[%11, %c0_9] : memref<64x512xf32, #tpu.memory_space<vmem>>, vector<8x512xf32>
    %13 = arith.truncf %7 : vector<8x128xf32> to vector<8x128xbf16>
    %c0_10 = arith.constant 0 : index
    %c0_11 = arith.constant 0 : index
    %14 = vector.load %arg2[%c0_10, %c0_11] : memref<128x512xbf16, #tpu.memory_space<vmem>>, vector<128x512xbf16>
    %cst_12 = arith.constant dense<0.000000e+00> : vector<8x512xf32>
    %15 = tpu.matmul %13, %14, %cst_12 {dimension_numbers = #tpu.dot_dimension_numbers<[1], [0], [0], [1], [0, 0, 1, 1], [], []>} : vector<8x128xbf16>, vector<128x512xbf16>, vector<8x512xf32> -> vector<8x512xf32>
    %16 = arith.addf %12, %15 : vector<8x512xf32>
    %17 = vector.extract_strided_slice %16 {offsets = [0, 0], sizes = [8, 128], strides = [1, 1]} : vector<8x512xf32> to vector<8x128xf32>
    %cst_13 = arith.constant 0.000000e+00 : f32
    %18 = vector.broadcast %cst_13 : f32 to vector<8x128xf32>
    %19 = arith.subf %18, %17 : vector<8x128xf32>
    %20 = math.exp %19 : vector<8x128xf32>
    %cst_14 = arith.constant 1.000000e+00 : f32
    %21 = vector.broadcast %cst_14 : f32 to vector<8x128xf32>
    %22 = arith.addf %21, %20 : vector<8x128xf32>
    %23 = tpu.reciprocal %22 {approx = true} : vector<8x128xf32> -> vector<8x128xf32>
    %24 = vector.extract_strided_slice %16 {offsets = [0, 128], sizes = [8, 128], strides = [1, 1]} : vector<8x512xf32> to vector<8x128xf32>
    %cst_15 = arith.constant 0.000000e+00 : f32
    %25 = vector.broadcast %cst_15 : f32 to vector<8x128xf32>
    %26 = arith.subf %25, %24 : vector<8x128xf32>
    %27 = math.exp %26 : vector<8x128xf32>
    %cst_16 = arith.constant 1.000000e+00 : f32
    %28 = vector.broadcast %cst_16 : f32 to vector<8x128xf32>
    %29 = arith.addf %28, %27 : vector<8x128xf32>
    %30 = tpu.reciprocal %29 {approx = true} : vector<8x128xf32> -> vector<8x128xf32>
    %31 = vector.extract_strided_slice %16 {offsets = [0, 256], sizes = [8, 128], strides = [1, 1]} : vector<8x512xf32> to vector<8x128xf32>
    %32 = math.tanh %31 : vector<8x128xf32>
    %33 = vector.extract_strided_slice %16 {offsets = [0, 384], sizes = [8, 128], strides = [1, 1]} : vector<8x512xf32> to vector<8x128xf32>
    %cst_17 = arith.constant 0.000000e+00 : f32
    %34 = vector.broadcast %cst_17 : f32 to vector<8x128xf32>
    %35 = arith.subf %34, %33 : vector<8x128xf32>
    %36 = math.exp %35 : vector<8x128xf32>
    %cst_18 = arith.constant 1.000000e+00 : f32
    %37 = vector.broadcast %cst_18 : f32 to vector<8x128xf32>
    %38 = arith.addf %37, %36 : vector<8x128xf32>
    %39 = tpu.reciprocal %38 {approx = true} : vector<8x128xf32> -> vector<8x128xf32>
    %40 = arith.mulf %30, %8 : vector<8x128xf32>
    %41 = arith.mulf %23, %32 : vector<8x128xf32>
    %42 = arith.addf %40, %41 : vector<8x128xf32>
    %43 = math.tanh %42 : vector<8x128xf32>
    %44 = arith.mulf %39, %43 : vector<8x128xf32>
    %c1_i32 = arith.constant 1 : i32
    %c8_i32_19 = arith.constant 8 : i32
    %45 = arith.muli %c1_i32, %c8_i32_19 : i32
    %46 = tpu.assume_multiple %45, 8 : i32
    %47 = arith.index_cast %46 : i32 to index
    %c0_20 = arith.constant 0 : index
    %48 = vector.load %arg9[%47, %c0_20] : memref<64x512xf32, #tpu.memory_space<vmem>>, vector<8x512xf32>
    %49 = arith.truncf %44 : vector<8x128xf32> to vector<8x128xbf16>
    %c0_21 = arith.constant 0 : index
    %c0_22 = arith.constant 0 : index
    %50 = vector.load %arg2[%c0_21, %c0_22] : memref<128x512xbf16, #tpu.memory_space<vmem>>, vector<128x512xbf16>
    %cst_23 = arith.constant dense<0.000000e+00> : vector<8x512xf32>
    %51 = tpu.matmul %49, %50, %cst_23 {dimension_numbers = #tpu.dot_dimension_numbers<[1], [0], [0], [1], [0, 0, 1, 1], [], []>} : vector<8x128xbf16>, vector<128x512xbf16>, vector<8x512xf32> -> vector<8x512xf32>
    %52 = arith.addf %48, %51 : vector<8x512xf32>
    %53 = vector.extract_strided_slice %52 {offsets = [0, 0], sizes = [8, 128], strides = [1, 1]} : vector<8x512xf32> to vector<8x128xf32>
    %cst_24 = arith.constant 0.000000e+00 : f32
    %54 = vector.broadcast %cst_24 : f32 to vector<8x128xf32>
    %55 = arith.subf %54, %53 : vector<8x128xf32>
    %56 = math.exp %55 : vector<8x128xf32>
    %cst_25 = arith.constant 1.000000e+00 : f32
    %57 = vector.broadcast %cst_25 : f32 to vector<8x128xf32>
    %58 = arith.addf %57, %56 : vector<8x128xf32>
    %59 = tpu.reciprocal %58 {approx = true} : vector<8x128xf32> -> vector<8x128xf32>
    %60 = vector.extract_strided_slice %52 {offsets = [0, 128], sizes = [8, 128], strides = [1, 1]} : vector<8x512xf32> to vector<8x128xf32>
    %cst_26 = arith.constant 0.000000e+00 : f32
    %61 = vector.broadcast %cst_26 : f32 to vector<8x128xf32>
    %62 = arith.subf %61, %60 : vector<8x128xf32>
    %63 = math.exp %62 : vector<8x128xf32>
    %cst_27 = arith.constant 1.000000e+00 : f32
    %64 = vector.broadcast %cst_27 : f32 to vector<8x128xf32>
    %65 = arith.addf %64, %63 : vector<8x128xf32>
    %66 = tpu.reciprocal %65 {approx = true} : vector<8x128xf32> -> vector<8x128xf32>
    %67 = vector.extract_strided_slice %52 {offsets = [0, 256], sizes = [8, 128], strides = [1, 1]} : vector<8x512xf32> to vector<8x128xf32>
    %68 = math.tanh %67 : vector<8x128xf32>
    %69 = vector.extract_strided_slice %52 {offsets = [0, 384], sizes = [8, 128], strides = [1, 1]} : vector<8x512xf32> to vector<8x128xf32>
    %cst_28 = arith.constant 0.000000e+00 : f32
    %70 = vector.broadcast %cst_28 : f32 to vector<8x128xf32>
    %71 = arith.subf %70, %69 : vector<8x128xf32>
    %72 = math.exp %71 : vector<8x128xf32>
    %cst_29 = arith.constant 1.000000e+00 : f32
    %73 = vector.broadcast %cst_29 : f32 to vector<8x128xf32>
    %74 = arith.addf %73, %72 : vector<8x128xf32>
    %75 = tpu.reciprocal %74 {approx = true} : vector<8x128xf32> -> vector<8x128xf32>
    %76 = arith.mulf %66, %42 : vector<8x128xf32>
    %77 = arith.mulf %59, %68 : vector<8x128xf32>
    %78 = arith.addf %76, %77 : vector<8x128xf32>
    %79 = math.tanh %78 : vector<8x128xf32>
    %80 = arith.mulf %75, %79 : vector<8x128xf32>
    %c2_i32 = arith.constant 2 : i32
    %c8_i32_30 = arith.constant 8 : i32
    %81 = arith.muli %c2_i32, %c8_i32_30 : i32
    %82 = tpu.assume_multiple %81, 8 : i32
    %83 = arith.index_cast %82 : i32 to index
    %c0_31 = arith.constant 0 : index
    %84 = vector.load %arg9[%83, %c0_31] : memref<64x512xf32, #tpu.memory_space<vmem>>, vector<8x512xf32>
    %85 = arith.truncf %80 : vector<8x128xf32> to vector<8x128xbf16>
    %c0_32 = arith.constant 0 : index
    %c0_33 = arith.constant 0 : index
    %86 = vector.load %arg2[%c0_32, %c0_33] : memref<128x512xbf16, #tpu.memory_space<vmem>>, vector<128x512xbf16>
    %cst_34 = arith.constant dense<0.000000e+00> : vector<8x512xf32>
    %87 = tpu.matmul %85, %86, %cst_34 {dimension_numbers = #tpu.dot_dimension_numbers<[1], [0], [0], [1], [0, 0, 1, 1], [], []>} : vector<8x128xbf16>, vector<128x512xbf16>, vector<8x512xf32> -> vector<8x512xf32>
    %88 = arith.addf %84, %87 : vector<8x512xf32>
    %89 = vector.extract_strided_slice %88 {offsets = [0, 0], sizes = [8, 128], strides = [1, 1]} : vector<8x512xf32> to vector<8x128xf32>
    %cst_35 = arith.constant 0.000000e+00 : f32
    %90 = vector.broadcast %cst_35 : f32 to vector<8x128xf32>
    %91 = arith.subf %90, %89 : vector<8x128xf32>
    %92 = math.exp %91 : vector<8x128xf32>
    %cst_36 = arith.constant 1.000000e+00 : f32
    %93 = vector.broadcast %cst_36 : f32 to vector<8x128xf32>
    %94 = arith.addf %93, %92 : vector<8x128xf32>
    %95 = tpu.reciprocal %94 {approx = true} : vector<8x128xf32> -> vector<8x128xf32>
    %96 = vector.extract_strided_slice %88 {offsets = [0, 128], sizes = [8, 128], strides = [1, 1]} : vector<8x512xf32> to vector<8x128xf32>
    %cst_37 = arith.constant 0.000000e+00 : f32
    %97 = vector.broadcast %cst_37 : f32 to vector<8x128xf32>
    %98 = arith.subf %97, %96 : vector<8x128xf32>
    %99 = math.exp %98 : vector<8x128xf32>
    %cst_38 = arith.constant 1.000000e+00 : f32
    %100 = vector.broadcast %cst_38 : f32 to vector<8x128xf32>
    %101 = arith.addf %100, %99 : vector<8x128xf32>
    %102 = tpu.reciprocal %101 {approx = true} : vector<8x128xf32> -> vector<8x128xf32>
    %103 = vector.extract_strided_slice %88 {offsets = [0, 256], sizes = [8, 128], strides = [1, 1]} : vector<8x512xf32> to vector<8x128xf32>
    %104 = math.tanh %103 : vector<8x128xf32>
    %105 = vector.extract_strided_slice %88 {offsets = [0, 384], sizes = [8, 128], strides = [1, 1]} : vector<8x512xf32> to vector<8x128xf32>
    %cst_39 = arith.constant 0.000000e+00 : f32
    %106 = vector.broadcast %cst_39 : f32 to vector<8x128xf32>
    %107 = arith.subf %106, %105 : vector<8x128xf32>
    %108 = math.exp %107 : vector<8x128xf32>
    %cst_40 = arith.constant 1.000000e+00 : f32
    %109 = vector.broadcast %cst_40 : f32 to vector<8x128xf32>
    %110 = arith.addf %109, %108 : vector<8x128xf32>
    %111 = tpu.reciprocal %110 {approx = true} : vector<8x128xf32> -> vector<8x128xf32>
    %112 = arith.mulf %102, %78 : vector<8x128xf32>
    %113 = arith.mulf %95, %104 : vector<8x128xf32>
    %114 = arith.addf %112, %113 : vector<8x128xf32>
    %115 = math.tanh %114 : vector<8x128xf32>
    %116 = arith.mulf %111, %115 : vector<8x128xf32>
    %c3_i32 = arith.constant 3 : i32
    %c8_i32_41 = arith.constant 8 : i32
    %117 = arith.muli %c3_i32, %c8_i32_41 : i32
    %118 = tpu.assume_multiple %117, 8 : i32
    %119 = arith.index_cast %118 : i32 to index
    %c0_42 = arith.constant 0 : index
    %120 = vector.load %arg9[%119, %c0_42] : memref<64x512xf32, #tpu.memory_space<vmem>>, vector<8x512xf32>
    %121 = arith.truncf %116 : vector<8x128xf32> to vector<8x128xbf16>
    %c0_43 = arith.constant 0 : index
    %c0_44 = arith.constant 0 : index
    %122 = vector.load %arg2[%c0_43, %c0_44] : memref<128x512xbf16, #tpu.memory_space<vmem>>, vector<128x512xbf16>
    %cst_45 = arith.constant dense<0.000000e+00> : vector<8x512xf32>
    %123 = tpu.matmul %121, %122, %cst_45 {dimension_numbers = #tpu.dot_dimension_numbers<[1], [0], [0], [1], [0, 0, 1, 1], [], []>} : vector<8x128xbf16>, vector<128x512xbf16>, vector<8x512xf32> -> vector<8x512xf32>
    %124 = arith.addf %120, %123 : vector<8x512xf32>
    %125 = vector.extract_strided_slice %124 {offsets = [0, 0], sizes = [8, 128], strides = [1, 1]} : vector<8x512xf32> to vector<8x128xf32>
    %cst_46 = arith.constant 0.000000e+00 : f32
    %126 = vector.broadcast %cst_46 : f32 to vector<8x128xf32>
    %127 = arith.subf %126, %125 : vector<8x128xf32>
    %128 = math.exp %127 : vector<8x128xf32>
    %cst_47 = arith.constant 1.000000e+00 : f32
    %129 = vector.broadcast %cst_47 : f32 to vector<8x128xf32>
    %130 = arith.addf %129, %128 : vector<8x128xf32>
    %131 = tpu.reciprocal %130 {approx = true} : vector<8x128xf32> -> vector<8x128xf32>
    %132 = vector.extract_strided_slice %124 {offsets = [0, 128], sizes = [8, 128], strides = [1, 1]} : vector<8x512xf32> to vector<8x128xf32>
    %cst_48 = arith.constant 0.000000e+00 : f32
    %133 = vector.broadcast %cst_48 : f32 to vector<8x128xf32>
    %134 = arith.subf %133, %132 : vector<8x128xf32>
    %135 = math.exp %134 : vector<8x128xf32>
    %cst_49 = arith.constant 1.000000e+00 : f32
    %136 = vector.broadcast %cst_49 : f32 to vector<8x128xf32>
    %137 = arith.addf %136, %135 : vector<8x128xf32>
    %138 = tpu.reciprocal %137 {approx = true} : vector<8x128xf32> -> vector<8x128xf32>
    %139 = vector.extract_strided_slice %124 {offsets = [0, 256], sizes = [8, 128], strides = [1, 1]} : vector<8x512xf32> to vector<8x128xf32>
    %140 = math.tanh %139 : vector<8x128xf32>
    %141 = vector.extract_strided_slice %124 {offsets = [0, 384], sizes = [8, 128], strides = [1, 1]} : vector<8x512xf32> to vector<8x128xf32>
    %cst_50 = arith.constant 0.000000e+00 : f32
    %142 = vector.broadcast %cst_50 : f32 to vector<8x128xf32>
    %143 = arith.subf %142, %141 : vector<8x128xf32>
    %144 = math.exp %143 : vector<8x128xf32>
    %cst_51 = arith.constant 1.000000e+00 : f32
    %145 = vector.broadcast %cst_51 : f32 to vector<8x128xf32>
    %146 = arith.addf %145, %144 : vector<8x128xf32>
    %147 = tpu.reciprocal %146 {approx = true} : vector<8x128xf32> -> vector<8x128xf32>
    %148 = arith.mulf %138, %114 : vector<8x128xf32>
    %149 = arith.mulf %131, %140 : vector<8x128xf32>
    %150 = arith.addf %148, %149 : vector<8x128xf32>
    %151 = math.tanh %150 : vector<8x128xf32>
    %152 = arith.mulf %147, %151 : vector<8x128xf32>
    %c4_i32 = arith.constant 4 : i32
    %c8_i32_52 = arith.constant 8 : i32
    %153 = arith.muli %c4_i32, %c8_i32_52 : i32
    %154 = tpu.assume_multiple %153, 8 : i32
    %155 = arith.index_cast %154 : i32 to index
    %c0_53 = arith.constant 0 : index
    %156 = vector.load %arg9[%155, %c0_53] : memref<64x512xf32, #tpu.memory_space<vmem>>, vector<8x512xf32>
    %157 = arith.truncf %152 : vector<8x128xf32> to vector<8x128xbf16>
    %c0_54 = arith.constant 0 : index
    %c0_55 = arith.constant 0 : index
    %158 = vector.load %arg2[%c0_54, %c0_55] : memref<128x512xbf16, #tpu.memory_space<vmem>>, vector<128x512xbf16>
    %cst_56 = arith.constant dense<0.000000e+00> : vector<8x512xf32>
    %159 = tpu.matmul %157, %158, %cst_56 {dimension_numbers = #tpu.dot_dimension_numbers<[1], [0], [0], [1], [0, 0, 1, 1], [], []>} : vector<8x128xbf16>, vector<128x512xbf16>, vector<8x512xf32> -> vector<8x512xf32>
    %160 = arith.addf %156, %159 : vector<8x512xf32>
    %161 = vector.extract_strided_slice %160 {offsets = [0, 0], sizes = [8, 128], strides = [1, 1]} : vector<8x512xf32> to vector<8x128xf32>
    %cst_57 = arith.constant 0.000000e+00 : f32
    %162 = vector.broadcast %cst_57 : f32 to vector<8x128xf32>
    %163 = arith.subf %162, %161 : vector<8x128xf32>
    %164 = math.exp %163 : vector<8x128xf32>
    %cst_58 = arith.constant 1.000000e+00 : f32
    %165 = vector.broadcast %cst_58 : f32 to vector<8x128xf32>
    %166 = arith.addf %165, %164 : vector<8x128xf32>
    %167 = tpu.reciprocal %166 {approx = true} : vector<8x128xf32> -> vector<8x128xf32>
    %168 = vector.extract_strided_slice %160 {offsets = [0, 128], sizes = [8, 128], strides = [1, 1]} : vector<8x512xf32> to vector<8x128xf32>
    %cst_59 = arith.constant 0.000000e+00 : f32
    %169 = vector.broadcast %cst_59 : f32 to vector<8x128xf32>
    %170 = arith.subf %169, %168 : vector<8x128xf32>
    %171 = math.exp %170 : vector<8x128xf32>
    %cst_60 = arith.constant 1.000000e+00 : f32
    %172 = vector.broadcast %cst_60 : f32 to vector<8x128xf32>
    %173 = arith.addf %172, %171 : vector<8x128xf32>
    %174 = tpu.reciprocal %173 {approx = true} : vector<8x128xf32> -> vector<8x128xf32>
    %175 = vector.extract_strided_slice %160 {offsets = [0, 256], sizes = [8, 128], strides = [1, 1]} : vector<8x512xf32> to vector<8x128xf32>
    %176 = math.tanh %175 : vector<8x128xf32>
    %177 = vector.extract_strided_slice %160 {offsets = [0, 384], sizes = [8, 128], strides = [1, 1]} : vector<8x512xf32> to vector<8x128xf32>
    %cst_61 = arith.constant 0.000000e+00 : f32
    %178 = vector.broadcast %cst_61 : f32 to vector<8x128xf32>
    %179 = arith.subf %178, %177 : vector<8x128xf32>
    %180 = math.exp %179 : vector<8x128xf32>
    %cst_62 = arith.constant 1.000000e+00 : f32
    %181 = vector.broadcast %cst_62 : f32 to vector<8x128xf32>
    %182 = arith.addf %181, %180 : vector<8x128xf32>
    %183 = tpu.reciprocal %182 {approx = true} : vector<8x128xf32> -> vector<8x128xf32>
    %184 = arith.mulf %174, %150 : vector<8x128xf32>
    %185 = arith.mulf %167, %176 : vector<8x128xf32>
    %186 = arith.addf %184, %185 : vector<8x128xf32>
    %187 = math.tanh %186 : vector<8x128xf32>
    %188 = arith.mulf %183, %187 : vector<8x128xf32>
    %c5_i32 = arith.constant 5 : i32
    %c8_i32_63 = arith.constant 8 : i32
    %189 = arith.muli %c5_i32, %c8_i32_63 : i32
    %190 = tpu.assume_multiple %189, 8 : i32
    %191 = arith.index_cast %190 : i32 to index
    %c0_64 = arith.constant 0 : index
    %192 = vector.load %arg9[%191, %c0_64] : memref<64x512xf32, #tpu.memory_space<vmem>>, vector<8x512xf32>
    %193 = arith.truncf %188 : vector<8x128xf32> to vector<8x128xbf16>
    %c0_65 = arith.constant 0 : index
    %c0_66 = arith.constant 0 : index
    %194 = vector.load %arg2[%c0_65, %c0_66] : memref<128x512xbf16, #tpu.memory_space<vmem>>, vector<128x512xbf16>
    %cst_67 = arith.constant dense<0.000000e+00> : vector<8x512xf32>
    %195 = tpu.matmul %193, %194, %cst_67 {dimension_numbers = #tpu.dot_dimension_numbers<[1], [0], [0], [1], [0, 0, 1, 1], [], []>} : vector<8x128xbf16>, vector<128x512xbf16>, vector<8x512xf32> -> vector<8x512xf32>
    %196 = arith.addf %192, %195 : vector<8x512xf32>
    %197 = vector.extract_strided_slice %196 {offsets = [0, 0], sizes = [8, 128], strides = [1, 1]} : vector<8x512xf32> to vector<8x128xf32>
    %cst_68 = arith.constant 0.000000e+00 : f32
    %198 = vector.broadcast %cst_68 : f32 to vector<8x128xf32>
    %199 = arith.subf %198, %197 : vector<8x128xf32>
    %200 = math.exp %199 : vector<8x128xf32>
    %cst_69 = arith.constant 1.000000e+00 : f32
    %201 = vector.broadcast %cst_69 : f32 to vector<8x128xf32>
    %202 = arith.addf %201, %200 : vector<8x128xf32>
    %203 = tpu.reciprocal %202 {approx = true} : vector<8x128xf32> -> vector<8x128xf32>
    %204 = vector.extract_strided_slice %196 {offsets = [0, 128], sizes = [8, 128], strides = [1, 1]} : vector<8x512xf32> to vector<8x128xf32>
    %cst_70 = arith.constant 0.000000e+00 : f32
    %205 = vector.broadcast %cst_70 : f32 to vector<8x128xf32>
    %206 = arith.subf %205, %204 : vector<8x128xf32>
    %207 = math.exp %206 : vector<8x128xf32>
    %cst_71 = arith.constant 1.000000e+00 : f32
    %208 = vector.broadcast %cst_71 : f32 to vector<8x128xf32>
    %209 = arith.addf %208, %207 : vector<8x128xf32>
    %210 = tpu.reciprocal %209 {approx = true} : vector<8x128xf32> -> vector<8x128xf32>
    %211 = vector.extract_strided_slice %196 {offsets = [0, 256], sizes = [8, 128], strides = [1, 1]} : vector<8x512xf32> to vector<8x128xf32>
    %212 = math.tanh %211 : vector<8x128xf32>
    %213 = vector.extract_strided_slice %196 {offsets = [0, 384], sizes = [8, 128], strides = [1, 1]} : vector<8x512xf32> to vector<8x128xf32>
    %cst_72 = arith.constant 0.000000e+00 : f32
    %214 = vector.broadcast %cst_72 : f32 to vector<8x128xf32>
    %215 = arith.subf %214, %213 : vector<8x128xf32>
    %216 = math.exp %215 : vector<8x128xf32>
    %cst_73 = arith.constant 1.000000e+00 : f32
    %217 = vector.broadcast %cst_73 : f32 to vector<8x128xf32>
    %218 = arith.addf %217, %216 : vector<8x128xf32>
    %219 = tpu.reciprocal %218 {approx = true} : vector<8x128xf32> -> vector<8x128xf32>
    %220 = arith.mulf %210, %186 : vector<8x128xf32>
    %221 = arith.mulf %203, %212 : vector<8x128xf32>
    %222 = arith.addf %220, %221 : vector<8x128xf32>
    %223 = math.tanh %222 : vector<8x128xf32>
    %224 = arith.mulf %219, %223 : vector<8x128xf32>
    %c6_i32 = arith.constant 6 : i32
    %c8_i32_74 = arith.constant 8 : i32
    %225 = arith.muli %c6_i32, %c8_i32_74 : i32
    %226 = tpu.assume_multiple %225, 8 : i32
    %227 = arith.index_cast %226 : i32 to index
    %c0_75 = arith.constant 0 : index
    %228 = vector.load %arg9[%227, %c0_75] : memref<64x512xf32, #tpu.memory_space<vmem>>, vector<8x512xf32>
    %229 = arith.truncf %224 : vector<8x128xf32> to vector<8x128xbf16>
    %c0_76 = arith.constant 0 : index
    %c0_77 = arith.constant 0 : index
    %230 = vector.load %arg2[%c0_76, %c0_77] : memref<128x512xbf16, #tpu.memory_space<vmem>>, vector<128x512xbf16>
    %cst_78 = arith.constant dense<0.000000e+00> : vector<8x512xf32>
    %231 = tpu.matmul %229, %230, %cst_78 {dimension_numbers = #tpu.dot_dimension_numbers<[1], [0], [0], [1], [0, 0, 1, 1], [], []>} : vector<8x128xbf16>, vector<128x512xbf16>, vector<8x512xf32> -> vector<8x512xf32>
    %232 = arith.addf %228, %231 : vector<8x512xf32>
    %233 = vector.extract_strided_slice %232 {offsets = [0, 0], sizes = [8, 128], strides = [1, 1]} : vector<8x512xf32> to vector<8x128xf32>
    %cst_79 = arith.constant 0.000000e+00 : f32
    %234 = vector.broadcast %cst_79 : f32 to vector<8x128xf32>
    %235 = arith.subf %234, %233 : vector<8x128xf32>
    %236 = math.exp %235 : vector<8x128xf32>
    %cst_80 = arith.constant 1.000000e+00 : f32
    %237 = vector.broadcast %cst_80 : f32 to vector<8x128xf32>
    %238 = arith.addf %237, %236 : vector<8x128xf32>
    %239 = tpu.reciprocal %238 {approx = true} : vector<8x128xf32> -> vector<8x128xf32>
    %240 = vector.extract_strided_slice %232 {offsets = [0, 128], sizes = [8, 128], strides = [1, 1]} : vector<8x512xf32> to vector<8x128xf32>
    %cst_81 = arith.constant 0.000000e+00 : f32
    %241 = vector.broadcast %cst_81 : f32 to vector<8x128xf32>
    %242 = arith.subf %241, %240 : vector<8x128xf32>
    %243 = math.exp %242 : vector<8x128xf32>
    %cst_82 = arith.constant 1.000000e+00 : f32
    %244 = vector.broadcast %cst_82 : f32 to vector<8x128xf32>
    %245 = arith.addf %244, %243 : vector<8x128xf32>
    %246 = tpu.reciprocal %245 {approx = true} : vector<8x128xf32> -> vector<8x128xf32>
    %247 = vector.extract_strided_slice %232 {offsets = [0, 256], sizes = [8, 128], strides = [1, 1]} : vector<8x512xf32> to vector<8x128xf32>
    %248 = math.tanh %247 : vector<8x128xf32>
    %249 = vector.extract_strided_slice %232 {offsets = [0, 384], sizes = [8, 128], strides = [1, 1]} : vector<8x512xf32> to vector<8x128xf32>
    %cst_83 = arith.constant 0.000000e+00 : f32
    %250 = vector.broadcast %cst_83 : f32 to vector<8x128xf32>
    %251 = arith.subf %250, %249 : vector<8x128xf32>
    %252 = math.exp %251 : vector<8x128xf32>
    %cst_84 = arith.constant 1.000000e+00 : f32
    %253 = vector.broadcast %cst_84 : f32 to vector<8x128xf32>
    %254 = arith.addf %253, %252 : vector<8x128xf32>
    %255 = tpu.reciprocal %254 {approx = true} : vector<8x128xf32> -> vector<8x128xf32>
    %256 = arith.mulf %246, %222 : vector<8x128xf32>
    %257 = arith.mulf %239, %248 : vector<8x128xf32>
    %258 = arith.addf %256, %257 : vector<8x128xf32>
    %259 = math.tanh %258 : vector<8x128xf32>
    %260 = arith.mulf %255, %259 : vector<8x128xf32>
    %c7_i32 = arith.constant 7 : i32
    %c8_i32_85 = arith.constant 8 : i32
    %261 = arith.muli %c7_i32, %c8_i32_85 : i32
    %262 = tpu.assume_multiple %261, 8 : i32
    %263 = arith.index_cast %262 : i32 to index
    %c0_86 = arith.constant 0 : index
    %264 = vector.load %arg9[%263, %c0_86] : memref<64x512xf32, #tpu.memory_space<vmem>>, vector<8x512xf32>
    %265 = arith.truncf %260 : vector<8x128xf32> to vector<8x128xbf16>
    %c0_87 = arith.constant 0 : index
    %c0_88 = arith.constant 0 : index
    %266 = vector.load %arg2[%c0_87, %c0_88] : memref<128x512xbf16, #tpu.memory_space<vmem>>, vector<128x512xbf16>
    %cst_89 = arith.constant dense<0.000000e+00> : vector<8x512xf32>
    %267 = tpu.matmul %265, %266, %cst_89 {dimension_numbers = #tpu.dot_dimension_numbers<[1], [0], [0], [1], [0, 0, 1, 1], [], []>} : vector<8x128xbf16>, vector<128x512xbf16>, vector<8x512xf32> -> vector<8x512xf32>
    %268 = arith.addf %264, %267 : vector<8x512xf32>
    %269 = vector.extract_strided_slice %268 {offsets = [0, 0], sizes = [8, 128], strides = [1, 1]} : vector<8x512xf32> to vector<8x128xf32>
    %cst_90 = arith.constant 0.000000e+00 : f32
    %270 = vector.broadcast %cst_90 : f32 to vector<8x128xf32>
    %271 = arith.subf %270, %269 : vector<8x128xf32>
    %272 = math.exp %271 : vector<8x128xf32>
    %cst_91 = arith.constant 1.000000e+00 : f32
    %273 = vector.broadcast %cst_91 : f32 to vector<8x128xf32>
    %274 = arith.addf %273, %272 : vector<8x128xf32>
    %275 = tpu.reciprocal %274 {approx = true} : vector<8x128xf32> -> vector<8x128xf32>
    %276 = vector.extract_strided_slice %268 {offsets = [0, 128], sizes = [8, 128], strides = [1, 1]} : vector<8x512xf32> to vector<8x128xf32>
    %cst_92 = arith.constant 0.000000e+00 : f32
    %277 = vector.broadcast %cst_92 : f32 to vector<8x128xf32>
    %278 = arith.subf %277, %276 : vector<8x128xf32>
    %279 = math.exp %278 : vector<8x128xf32>
    %cst_93 = arith.constant 1.000000e+00 : f32
    %280 = vector.broadcast %cst_93 : f32 to vector<8x128xf32>
    %281 = arith.addf %280, %279 : vector<8x128xf32>
    %282 = tpu.reciprocal %281 {approx = true} : vector<8x128xf32> -> vector<8x128xf32>
    %283 = vector.extract_strided_slice %268 {offsets = [0, 256], sizes = [8, 128], strides = [1, 1]} : vector<8x512xf32> to vector<8x128xf32>
    %284 = math.tanh %283 : vector<8x128xf32>
    %285 = vector.extract_strided_slice %268 {offsets = [0, 384], sizes = [8, 128], strides = [1, 1]} : vector<8x512xf32> to vector<8x128xf32>
    %cst_94 = arith.constant 0.000000e+00 : f32
    %286 = vector.broadcast %cst_94 : f32 to vector<8x128xf32>
    %287 = arith.subf %286, %285 : vector<8x128xf32>
    %288 = math.exp %287 : vector<8x128xf32>
    %cst_95 = arith.constant 1.000000e+00 : f32
    %289 = vector.broadcast %cst_95 : f32 to vector<8x128xf32>
    %290 = arith.addf %289, %288 : vector<8x128xf32>
    %291 = tpu.reciprocal %290 {approx = true} : vector<8x128xf32> -> vector<8x128xf32>
    %292 = arith.mulf %282, %258 : vector<8x128xf32>
    %293 = arith.mulf %275, %284 : vector<8x128xf32>
    %294 = arith.addf %292, %293 : vector<8x128xf32>
    %295 = math.tanh %294 : vector<8x128xf32>
    %296 = arith.mulf %291, %295 : vector<8x128xf32>
    %c8_i32_96 = arith.constant 8 : i32
    %297 = arith.truncf %296 : vector<8x128xf32> to vector<8x128xbf16>
    %c0_97 = arith.constant 0 : index
    %c0_98 = arith.constant 0 : index
    %298 = vector.load %arg4[%c0_97, %c0_98] : memref<128x1024xbf16, #tpu.memory_space<vmem>>, vector<128x1024xbf16>
    %cst_99 = arith.constant dense<0.000000e+00> : vector<8x1024xf32>
    %299 = tpu.matmul %297, %298, %cst_99 {dimension_numbers = #tpu.dot_dimension_numbers<[1], [0], [0], [1], [0, 0, 1, 1], [], []>} : vector<8x128xbf16>, vector<128x1024xbf16>, vector<8x1024xf32> -> vector<8x1024xf32>
    %c0_100 = arith.constant 0 : index
    %c0_101 = arith.constant 0 : index
    %300 = vector.load %arg5[%c0_100, %c0_101] : memref<1x1024xf32, #tpu.memory_space<vmem>>, vector<1x1024xf32>
    %301 = vector.broadcast %300 : vector<1x1024xf32> to vector<8x1024xf32>
    %302 = arith.addf %299, %301 : vector<8x1024xf32>
    %cst_102 = arith.constant 0.000000e+00 : f32
    %303 = vector.broadcast %cst_102 : f32 to vector<8x1024xf32>
    %304 = arith.maximumf %302, %303 : vector<8x1024xf32>
    %305 = arith.truncf %304 : vector<8x1024xf32> to vector<8x1024xbf16>
    %c0_103 = arith.constant 0 : index
    %c0_104 = arith.constant 0 : index
    %306 = vector.load %arg6[%c0_103, %c0_104] : memref<1024x128xbf16, #tpu.memory_space<vmem>>, vector<1024x128xbf16>
    %cst_105 = arith.constant dense<0.000000e+00> : vector<8x128xf32>
    %307 = tpu.matmul %305, %306, %cst_105 {dimension_numbers = #tpu.dot_dimension_numbers<[1], [0], [0], [1], [0, 0, 1, 1], [], []>} : vector<8x1024xbf16>, vector<1024x128xbf16>, vector<8x128xf32> -> vector<8x128xf32>
    %c0_106 = arith.constant 0 : index
    %c0_107 = arith.constant 0 : index
    %308 = vector.load %arg7[%c0_106, %c0_107] : memref<1x128xf32, #tpu.memory_space<vmem>>, vector<1x128xf32>
    %309 = vector.broadcast %308 : vector<1x128xf32> to vector<8x128xf32>
    %310 = arith.addf %307, %309 : vector<8x128xf32>
    %c0_108 = arith.constant 0 : index
    %c0_109 = arith.constant 0 : index
    %311 = vector.load %arg8[%c0_108, %c0_109] : memref<8x128xf32, #tpu.memory_space<vmem>>, vector<8x128xf32>
    tpu.vector_store %arg8[%c0_108, %c0_109], %310 {strides = array<i32>} : memref<8x128xf32, #tpu.memory_space<vmem>>, vector<8x128xf32>,
    return
  }
}

</mosaic_0001>

<bundles_post_ra>
// kernel: tpu_custom_call.1
= control target key start
LH: loop header
LB: loop body
LE: loop exit
PB: predicated region body
PF: predicated region fallthrough
CT: control target
= control target key end

     0   :  { %13 = vsyncpa [#allocation4], 0  ;;  %s4253_s0 = inlined_call_operand.vmem [shape: bf16[64,32], index: 0, kind: input, shape index: {}]   ;;  %s4254_s1 = inlined_call_operand.hbm [shape: bf16[32,512], index: 1, kind: input, shape index: {}]   ;;  %s4255_s2 = inlined_call_operand.hbm [shape: bf16[128,512], index: 2, kind: input, shape index: {}]   ;;  %s4256_s3 = inlined_call_operand.vmem [shape: f32[1,512], index: 3, kind: input, shape index: {}]   ;;  %s4257_s4 = inlined_call_operand.hbm [shape: bf16[128,1024], index: 4, kind: input, shape index: {}]   ;;  %s4258_s5 = inlined_call_operand.vmem [shape: f32[1,1024], index: 5, kind: input, shape index: {}]   ;;  %s4259_s6 = inlined_call_operand.hbm [shape: bf16[1024,128], index: 6, kind: input, shape index: {}]   ;;  %s4260_s7 = inlined_call_operand.vmem [shape: f32[1,128], index: 7, kind: input, shape index: {}]   ;;  %s4261_s8 = inlined_call_operand.hbm [shape: f32[8,128], index: 8, kind: output, shape index: {}]  }
   0x1   :  { %14 = vsyncpa [#allocation7], 0 }
   0x2   :  { %15 = vsyncpa [#allocation10], 0 }
   0x3   :  { %16 = vsyncpa [#allocation5], 0  ;;  %s3484_s27 = smov [#allocation6]   ;;  %s3485_s29 = smov [#allocation3]  }
   0x4   :  { %s36_s28 = sshll.u32 %s3484_s27, 4  ;;  %s24_s30 = sshll.u32 %s3485_s29, 4  ;;  %s37_s28 = int_to_ptr.vmem [resolvable:$true] %s36_s28  ;;  %s3541_s30 = int_to_ptr.vmem [resolvable:$true] %s24_s30 }
   0x5   :  { %s3366_s11 = scalar_lea.hbm %s4255_s2, 4096 }
   0x6   :  { %p3367_p0 = scmp.ne.s32.totalorder %s4255_s2, %s3366_s11  ;;  %p3370_p1 = scmp.lt.u32.totalorder %s3366_s11, %s4255_s2 }
   0x8   :  { %p3372_p2 = pnand %p3370_p1, %p3367_p0 }
   0xa   :  { %3375 = shalt.err (!%p3372_p2)
}
   0xb   :  { %s3376_s16 = scalar_lea.vmem %s37_s28, 4096  ;;  %p3381_p4 = scmp.lt.s32.totalorder %s37_s28, %s37_s28 }
   0xc   :  { %p3377_p3 = scmp.ne.s32.totalorder %s37_s28, %s3376_s16  ;;  %p3382_p5 = scmp.lt.s32.totalorder %s3376_s16, %s3376_s16 }
   0xe   :  { %p3383_p6 = por %p3382_p5, %p3381_p4 }
  0x10   :  { %p3384_p7 = pnand %p3383_p6, %p3377_p3 }
  0x12   :  { %3387 = shalt.err (!%p3384_p7)
}
  0x13   :  { %s3486_s17 = smov 256   ;;  %s3487_s18 = smov 16  }
  0x14   :  { %42 = dma.hbm_to_vmem [thread:$0]  %s4255_s2, 4096, %s37_s28, [#allocation7], %s3486_s17, %s3486_s17, %s3487_s18  }
  0x15   :  { %s3388_s23 = scalar_lea.hbm %s4254_s1, 1024 }
  0x16   :  { %p3389_p8 = scmp.ne.s32.totalorder %s4254_s1, %s3388_s23  ;;  %p3392_p9 = scmp.lt.u32.totalorder %s3388_s23, %s4254_s1 }
  0x18   :  { %p3394_p10 = pnand %p3392_p9, %p3389_p8 }
  0x1a   :  { %3397 = shalt.err (!%p3394_p10)
}
  0x1b   :  { %s3398_s29 = scalar_lea.vmem %s3541_s30, 1024  ;;  %p3403_p12 = scmp.lt.s32.totalorder %s3541_s30, %s3541_s30 }
  0x1c   :  { %p3399_p11 = scmp.ne.s32.totalorder %s3541_s30, %s3398_s29  ;;  %p3404_p13 = scmp.lt.s32.totalorder %s3398_s29, %s3398_s29 }
  0x1e   :  { %p3405_p0 = por %p3404_p13, %p3403_p12 }
  0x20   :  { %p3406_p1 = pnand %p3405_p0, %p3399_p11 }
  0x22   :  { %3409 = shalt.err (!%p3406_p1)
}
  0x23   :  { %30 = dma.hbm_to_vmem [thread:$0]  %s4254_s1, 1024, %s3541_s30, [#allocation4], %s3486_s17, %s3486_s17, %s3487_s18  }
  0x24   :  { %s3488_s9 = smov [#allocation8]   ;;  %s3410_s13 = scalar_lea.hbm %s4257_s4, 8192 }
  0x25   :  { %s50_s10 = sshll.u32 %s3488_s9, 4  ;;  %p3411_p2 = scmp.ne.s32.totalorder %s4257_s4, %s3410_s13  ;;  %s51_s10 = int_to_ptr.vmem [resolvable:$true] %s50_s10 }
  0x26   :  { %p3414_p3 = scmp.lt.u32.totalorder %s3410_s13, %s4257_s4 }
  0x28   :  { %p3416_p4 = pnand %p3414_p3, %p3411_p2 }
  0x2a   :  { %3419 = shalt.err (!%p3416_p4)
}
  0x2b   :  { %s3420_s20 = scalar_lea.vmem %s51_s10, 8192  ;;  %p3425_p6 = scmp.lt.s32.totalorder %s51_s10, %s51_s10 }
  0x2c   :  { %p3421_p5 = scmp.ne.s32.totalorder %s51_s10, %s3420_s20  ;;  %p3426_p7 = scmp.lt.s32.totalorder %s3420_s20, %s3420_s20 }
  0x2e   :  { %p3427_p8 = por %p3426_p7, %p3425_p6 }
  0x30   :  { %p3428_p9 = pnand %p3427_p8, %p3421_p5 }
  0x32   :  { %3431 = shalt.err (!%p3428_p9)
}
  0x33   :  { %s3489_s1 = smov 512   ;;  %s3490_s30 = smov 32  }
  0x34   :  { %56 = dma.hbm_to_vmem [thread:$0]  %s4257_s4, 8192, %s51_s10, [#allocation7], %s3489_s1, %s3489_s1, %s3490_s30  }
  0x35   :  { %s3491_s21 = smov [#allocation9]   ;;  %s3432_s25 = scalar_lea.hbm %s4259_s6, 8192 }
  0x36   :  { %s64_s22 = sshll.u32 %s3491_s21, 4  ;;  %p3433_p10 = scmp.ne.s32.totalorder %s4259_s6, %s3432_s25  ;;  %s65_s22 = int_to_ptr.vmem [resolvable:$true] %s64_s22 }
  0x37   :  { %p3436_p11 = scmp.lt.u32.totalorder %s3432_s25, %s4259_s6 }
  0x39   :  { %p3438_p12 = pnand %p3436_p11, %p3433_p10 }
  0x3b   :  { %3441 = shalt.err (!%p3438_p12)
}
  0x3c   :  { %s3442_s28 = scalar_lea.vmem %s65_s22, 8192  ;;  %p3447_p0 = scmp.lt.s32.totalorder %s65_s22, %s65_s22 }
  0x3d   :  { %p3443_p13 = scmp.ne.s32.totalorder %s65_s22, %s3442_s28  ;;  %p3448_p1 = scmp.lt.s32.totalorder %s3442_s28, %s3442_s28 }
  0x3f   :  { %p3449_p2 = por %p3448_p1, %p3447_p0 }
  0x41   :  { %p3450_p3 = pnand %p3449_p2, %p3443_p13 }
  0x43   :  { %3453 = shalt.err (!%p3450_p3)
}
  0x44   :  { %s3492_s4 = smov 64   ;;  %s3493_s9 = smov 4  }
  0x45   :  { %70 = dma.hbm_to_vmem [thread:$0]  %s4259_s6, 8192, %s65_s22, [#allocation10], %s3492_s4, %s3492_s4, %s3493_s9  }
  0x46   :  { %3476 = dma.done.wait [#allocation4], 1024  }
  0x47   :  { %3477 = vsyncadd [#allocation4], 4294966272 }
  0x48   :  { %3478 = dma.done.wait [#allocation7], 12288  }
  0x49   :  { %3479 = vsyncadd [#allocation7], 4294955008 }
  0x4a   :  { %3480 = dma.done.wait [#allocation10], 8192  }
  0x4b   :  { %3481 = vsyncadd [#allocation10], 4294959104  ;;  %v4266_v0 = vmov 0   ;;  %v3078_v1 = vld [vmem:[#allocation3 + $0x4] ss:$16 sps:$4 sm:$0xff]   ;;  %vm184_vm0 = vcmask 261120   ;;  %v104_v45 = vlaneseq }
  0x4c   :  { %229 = vmatprep.mubr.bf16.mxu0 %v4266_v0  ;;  %302 = vmatprep.mubr.bf16.mxu1 %v4266_v0  ;;  %v3080_v2 = vld [vmem:[#allocation3 + $0xc] ss:$16 sps:$4 sm:$0xff]   ;;  %v3082_v3 = vld [vmem:[#allocation3] ss:$16 sps:$4 sm:$0xff]   ;;  %v3083_v4 = vld [vmem:[#allocation3 + $0x8] ss:$16 sps:$4 sm:$0xff]  }
  0x4d   :  { %197 = vmatprep.subr.bf16.mxu0 %v3078_v1  ;;  %270 = vmatprep.subr.bf16.mxu1 %v3080_v2  ;;  %v3084_v5 = vld [vmem:[#allocation3 + $0x24] ss:$16 sps:$4 sm:$0xff]   ;;  %v3086_v6 = vld [vmem:[#allocation3 + $0x2c] ss:$16 sps:$4 sm:$0xff]   ;;  %v3088_v7 = vld [vmem:[#allocation3 + $0x20] ss:$16 sps:$4 sm:$0xff]  }
  0x4e   :  { %198 = vmatpush1.bf16.msra.mxu0 %v3082_v3  ;;  %271 = vmatpush1.bf16.msra.mxu1 %v3083_v4  ;;  %v3089_v8 = vld [vmem:[#allocation3 + $0x28] ss:$16 sps:$4 sm:$0xff]   ;;  %v3090_v9 = vld [vmem:[%s4253_s0] sm:$0xff]   ;;  %v3603_v11 = vld [vmem:[#allocation6 + $0xc] ss:$16 sps:$4 sm:$0xff]   ;;  %v3760_v46 = vshrl.u32 %v104_v45, 7 }
  0x4f   :  { %199 = vmatprep.subr.bf16.mxu0 %v3084_v5  ;;  %272 = vmatprep.subr.bf16.mxu1 %v3086_v6  ;;  %v3601_v10 = vld [vmem:[#allocation6 + $0x4] ss:$16 sps:$4 sm:$0xff]   ;;  %v3605_v12 = vld [vmem:[#allocation6] ss:$16 sps:$4 sm:$0xff]   ;;  %v3607_v13 = vld [vmem:[#allocation6 + $0x8] ss:$16 sps:$4 sm:$0xff]  }
  0x50   :  { %v3610_v14 = vld [vmem:[#allocation6 + $0x24] ss:$16 sps:$4 sm:$0xff]   ;;  %v3613_v15 = vld [vmem:[#allocation6 + $0x2c] ss:$16 sps:$4 sm:$0xff]   ;;  %v3617_v16 = vld [vmem:[#allocation6 + $0x20] ss:$16 sps:$4 sm:$0xff]  }
  0x51   :  { %v3621_v17 = vld [vmem:[#allocation6 + $0x28] ss:$16 sps:$4 sm:$0xff]   ;;  %v3625_v18 = vld [vmem:[#allocation6 + $0x44] ss:$16 sps:$4 sm:$0xff]   ;;  %v3632_v20 = vld [vmem:[#allocation6 + $0x4c] ss:$16 sps:$4 sm:$0xff]  }
  0x52   :  { %200 = vmatpush1.bf16.msra.mxu0 %v3088_v7  ;;  %273 = vmatpush1.bf16.msra.mxu1 %v3089_v8  ;;  %v3103_v19 = vld [vmem:[%s4253_s0 + $0x8] sm:$0xff]   ;;  %v3634_v21 = vld [vmem:[#allocation6 + $0x40] ss:$16 sps:$4 sm:$0xff]   ;;  %v3642_v23 = vld [vmem:[#allocation6 + $0x64] ss:$16 sps:$4 sm:$0xff]   ;;  %4270 = vst [vmem:[#allocation16_spill] sm:$0xff] %v3760_v46 }
  0x53   :  { %574 = vmatprep.subr.bf16.mxu0 %v3601_v10  ;;  %615 = vmatprep.subr.bf16.mxu1 %v3603_v11  ;;  %v3638_v22 = vld [vmem:[#allocation6 + $0x48] ss:$16 sps:$4 sm:$0xff]   ;;  %v3644_v24 = vld [vmem:[#allocation6 + $0x6c] ss:$16 sps:$4 sm:$0xff]   ;;  %v3648_v25 = vld [vmem:[#allocation6 + $0x60] ss:$16 sps:$4 sm:$0xff]  }
  0x54   :  { %v3652_v26 = vld [vmem:[#allocation6 + $0x68] ss:$16 sps:$4 sm:$0xff]   ;;  %v3656_v27 = vld [vmem:[#allocation6 + $0x84] ss:$16 sps:$4 sm:$0xff]   ;;  %v3658_v28 = vld [vmem:[#allocation6 + $0x8c] ss:$16 sps:$4 sm:$0xff]  }
  0x55   :  { %2809 = vmatmul.mubr.msk.bf16.vlgmr.msra.gmra.mrb[0].mxu0 %vm184_vm0, %v3090_v9  ;;  %2813 = vmatmul.mubr.msk.bf16.vlgmr.msra.gmra.mrb[0].mxu1 %vm184_vm0, %v3090_v9  ;;  %v3116_v29 = vld [vmem:[%s4253_s0 + $0x10] sm:$0xff]   ;;  %v3667_v31 = vld [vmem:[#allocation6 + $0x88] ss:$16 sps:$4 sm:$0xff]   ;;  %v3675_v33 = vld [vmem:[#allocation6 + $0xac] ss:$16 sps:$4 sm:$0xff]   ;;  %v4264_v47 = vsub.s32 2, %v3760_v46 }
  0x56   :  { %575 = vmatpush1.bf16.msra.mxu0 %v3605_v12  ;;  %616 = vmatpush1.bf16.msra.mxu1 %v3607_v13  ;;  %v3665_v30 = vld [vmem:[#allocation6 + $0x80] ss:$16 sps:$4 sm:$0xff]   ;;  %v3671_v32 = vld [vmem:[#allocation6 + $0xa4] ss:$16 sps:$4 sm:$0xff]   ;;  %v3681_v35 = vld [vmem:[#allocation6 + $0xa8] ss:$16 sps:$4 sm:$0xff]  }
  0x57   :  { %576 = vmatprep.subr.bf16.mxu0 %v3610_v14  ;;  %617 = vmatprep.subr.bf16.mxu1 %v3613_v15  ;;  %v3679_v34 = vld [vmem:[#allocation6 + $0xa0] ss:$16 sps:$4 sm:$0xff]   ;;  %v3685_v36 = vld [vmem:[#allocation6 + $0xc4] ss:$16 sps:$4 sm:$0xff]   ;;  %v3689_v37 = vld [vmem:[#allocation6 + $0xcc] ss:$16 sps:$4 sm:$0xff]  }
  0x58   :  { %239 = vmatprep.mubr.bf16.mxu0 %v4266_v0  ;;  %312 = vmatprep.mubr.bf16.mxu1 %v4266_v0  ;;  %v3129_v38 = vld [vmem:[%s4253_s0 + $0x18] sm:$0xff]   ;;  %v3696_v39 = vld [vmem:[#allocation6 + $0xc0] ss:$16 sps:$4 sm:$0xff]   ;;  %v3700_v41 = vld [vmem:[#allocation6 + $0xe4] ss:$16 sps:$4 sm:$0xff]   ;;  %v4262_v48 = vsub.s32 3, %v3760_v46 }
  0x59   :  { %v3698_v40 = vld [vmem:[#allocation6 + $0xc8] ss:$16 sps:$4 sm:$0xff]   ;;  %v3702_v42 = vld [vmem:[#allocation6 + $0xec] ss:$16 sps:$4 sm:$0xff]   ;;  %v3708_v43 = vld [vmem:[#allocation6 + $0xe0] ss:$16 sps:$4 sm:$0xff]  }
  0x5a   :  { %577 = vmatpush1.bf16.msra.mxu0 %v3617_v16  ;;  %618 = vmatpush1.bf16.msra.mxu1 %v3621_v17  ;;  %v3710_v44 = vld [vmem:[#allocation6 + $0xe8] ss:$16 sps:$4 sm:$0xff]   ;;  %v4265_v49 = vsub.s32 0, %v3760_v46  ;;  %v102_v50 = vld [vmem:[%s4256_s3] sm:$0xf]  ;;  %v4263_v51 = vsub.s32 1, %v3760_v46 }
  0x5b   :  { %578 = vmatprep.subr.bf16.mxu0 %v3625_v18  ;;  %619 = vmatprep.subr.bf16.mxu1 %v3632_v20  ;;  %v3771_v52 = vrot.slane %v102_v50, %v4264_v47  ;;  %v3779_v55 = vrot.slane %v102_v50, %v4262_v48 }
  0x5c   :  { %v107_v56 = vrot.slane %v102_v50, %v4265_v49  ;;  %v111_v59 = vrot.slane %v102_v50, %v4263_v51 }
  0x5d   :  { %2810 = vmatmul.mubr.msk.bf16.gmra.mrb[4].mxu0 %vm184_vm0, %v3103_v19  ;;  %2814 = vmatmul.mubr.msk.bf16.gmra.mrb[4].mxu1 %vm184_vm0, %v3103_v19 }
  0x5e   :  { %579 = vmatpush1.bf16.msra.mxu0 %v3634_v21  ;;  %620 = vmatpush1.bf16.msra.mxu1 %v3638_v22 }
  0x5f   :  { %580 = vmatprep.subr.bf16.mxu0 %v3642_v23  ;;  %621 = vmatprep.subr.bf16.mxu1 %v3644_v24 }
  0x60   :  { %249 = vmatprep.mubr.bf16.mxu0 %v4266_v0  ;;  %322 = vmatprep.mubr.bf16.mxu1 %v4266_v0 }
  0x62   :  { %581 = vmatpush1.bf16.msra.mxu0 %v3648_v25  ;;  %622 = vmatpush1.bf16.msra.mxu1 %v3652_v26 }
  0x63   :  { %582 = vmatprep.subr.bf16.mxu0 %v3656_v27  ;;  %623 = vmatprep.subr.bf16.mxu1 %v3658_v28 }
  0x65   :  { %2811 = vmatmul.mubr.msk.bf16.gmra.mrb[8].mxu0 %vm184_vm0, %v3116_v29  ;;  %2815 = vmatmul.mubr.msk.bf16.gmra.mrb[8].mxu1 %vm184_vm0, %v3116_v29 }
  0x66   :  { %583 = vmatpush1.bf16.msra.mxu0 %v3665_v30  ;;  %624 = vmatpush1.bf16.msra.mxu1 %v3667_v31 }
  0x67   :  { %584 = vmatprep.subr.bf16.mxu0 %v3671_v32  ;;  %625 = vmatprep.subr.bf16.mxu1 %v3675_v33 }
  0x68   :  { %259 = vmatprep.mubr.bf16.mxu0 %v4266_v0  ;;  %332 = vmatprep.mubr.bf16.mxu1 %v4266_v0 }
  0x6a   :  { %585 = vmatpush1.bf16.msra.mxu0 %v3679_v34  ;;  %626 = vmatpush1.bf16.msra.mxu1 %v3681_v35 }
  0x6b   :  { %586 = vmatprep.subr.bf16.mxu0 %v3685_v36  ;;  %627 = vmatprep.subr.bf16.mxu1 %v3689_v37 }
  0x6d   :  { %2812 = vmatmul.mubr.msk.bf16.gmra.mrb[12].mxu0 %vm184_vm0, %v3129_v38  ;;  %2816 = vmatmul.mubr.msk.bf16.gmra.mrb[12].mxu1 %vm184_vm0, %v3129_v38 }
  0x6e   :  { %587 = vmatpush1.bf16.msra.mxu0 %v3696_v39  ;;  %628 = vmatpush1.bf16.msra.mxu1 %v3698_v40 }
  0x6f   :  { %588 = vmatprep.subr.bf16.mxu0 %v3700_v41  ;;  %629 = vmatprep.subr.bf16.mxu1 %v3702_v42 }
  0x70   :  { %606 = vmatprep.mubr.bf16.mxu0 %v4266_v0  ;;  %647 = vmatprep.mubr.bf16.mxu1 %v4266_v0 }
  0x72   :  { %589 = vmatpush1.bf16.msra.mxu0 %v3708_v43  ;;  %630 = vmatpush1.bf16.msra.mxu1 %v3710_v44 }
  0x73   :  { %689 = vmatprep.subr.bf16.mxu0 %v3601_v10  ;;  %730 = vmatprep.subr.bf16.mxu1 %v3603_v11 }
  0x75   :  { %607 = vmatmul.mubr.bf16.vlgmr.msra.gmra.mrb[16].mxu0 %v4266_v0  ;;  %648 = vmatmul.mubr.bf16.vlgmr.msra.gmra.mrb[16].mxu1 %v4266_v0 }
  0x76   :  { %690 = vmatpush1.bf16.msra.mxu0 %v3605_v12  ;;  %731 = vmatpush1.bf16.msra.mxu1 %v3607_v13 }
  0x77   :  { %691 = vmatprep.subr.bf16.mxu0 %v3610_v14  ;;  %732 = vmatprep.subr.bf16.mxu1 %v3613_v15 }
  0x78   :  { %721 = vmatprep.mubr.bf16.mxu0 %v4266_v0  ;;  %762 = vmatprep.mubr.bf16.mxu1 %v4266_v0 }
  0x7a   :  { %692 = vmatpush1.bf16.msra.mxu0 %v3617_v16  ;;  %733 = vmatpush1.bf16.msra.mxu1 %v3621_v17 }
  0x7b   :  { %693 = vmatprep.subr.bf16.mxu0 %v3625_v18  ;;  %734 = vmatprep.subr.bf16.mxu1 %v3632_v20 }
  0x7e   :  { %694 = vmatpush1.bf16.msra.mxu0 %v3634_v21  ;;  %735 = vmatpush1.bf16.msra.mxu1 %v3638_v22 }
  0x7f   :  { %695 = vmatprep.subr.bf16.mxu0 %v3642_v23  ;;  %736 = vmatprep.subr.bf16.mxu1 %v3644_v24 }
  0x82   :  { %696 = vmatpush1.bf16.msra.mxu0 %v3648_v25  ;;  %737 = vmatpush1.bf16.msra.mxu1 %v3652_v26 }
  0x83   :  { %697 = vmatprep.subr.bf16.mxu0 %v3656_v27  ;;  %738 = vmatprep.subr.bf16.mxu1 %v3658_v28 }
  0x86   :  { %698 = vmatpush1.bf16.msra.mxu0 %v3665_v30  ;;  %739 = vmatpush1.bf16.msra.mxu1 %v3667_v31 }
  0x87   :  { %699 = vmatprep.subr.bf16.mxu0 %v3671_v32  ;;  %740 = vmatprep.subr.bf16.mxu1 %v3675_v33 }
  0x8a   :  { %700 = vmatpush1.bf16.msra.mxu0 %v3679_v34  ;;  %741 = vmatpush1.bf16.msra.mxu1 %v3681_v35 }
  0x8b   :  { %701 = vmatprep.subr.bf16.mxu0 %v3685_v36  ;;  %742 = vmatprep.subr.bf16.mxu1 %v3689_v37 }
  0x8e   :  { %702 = vmatpush1.bf16.msra.mxu0 %v3696_v39  ;;  %743 = vmatpush1.bf16.msra.mxu1 %v3698_v40 }
  0x8f   :  { %703 = vmatprep.subr.bf16.mxu0 %v3700_v41  ;;  %744 = vmatprep.subr.bf16.mxu1 %v3702_v42 }
  0x92   :  { %704 = vmatpush1.bf16.msra.mxu0 %v3708_v43  ;;  %745 = vmatpush1.bf16.msra.mxu1 %v3710_v44 }
  0x93   :  { %804 = vmatprep.subr.bf16.mxu0 %v3601_v10  ;;  %845 = vmatprep.subr.bf16.mxu1 %v3603_v11 }
 0x128   :  { %v3773_v53 = vpop.f32.mrb[0].mxu0  ;;  %v3775_v54 = vpop.f32.mrb[0].mxu1 }
 0x129   :  { %v233_v57 = vpop.f32.mrb[1].mxu0  ;;  %v306_v58 = vpop.f32.mrb[1].mxu1 }
 0x12a   :  { %v235_v60 = vpop.f32.mrb[2].mxu0  ;;  %v308_v61 = vpop.f32.mrb[2].mxu1 }
 0x12b   :  { %v3785_v62 = vadd.f32 %v235_v60, %v107_v56  ;;  %v237_v63 = vpop.f32.mrb[3].mxu0  ;;  %v3788_v1 = vadd.f32 %v308_v61, %v3771_v52  ;;  %v310_v2 = vpop.f32.mrb[3].mxu1 }
 0x12c   :  { %v3790_v3 = vadd.f32 %v237_v63, %v111_v59  ;;  %v3793_v4 = vadd.f32 %v310_v2, %v3779_v55 }
 0x130   :  { %v241_v5 = vpop.f32.mrb[4].mxu0  ;;  %v314_v6 = vpop.f32.mrb[4].mxu1 }
 0x131   :  { %v3795_v7 = vadd.f32 %v241_v5, %v107_v56  ;;  %v243_v8 = vpop.f32.mrb[5].mxu0  ;;  %v3798_v9 = vadd.f32 %v314_v6, %v3771_v52  ;;  %v316_v19 = vpop.f32.mrb[5].mxu1 }
 0x132   :  { %v3800_v29 = vadd.f32 %v243_v8, %v111_v59  ;;  %v245_v38 = vpop.f32.mrb[6].mxu0  ;;  %v3803_v45 = vadd.f32 %v316_v19, %v3779_v55  ;;  %v318_v50 = vpop.f32.mrb[6].mxu1 }
 0x133   :  { %v3805_v60 = vadd.f32 %v245_v38, %v107_v56  ;;  %v247_v61 = vpop.f32.mrb[7].mxu0  ;;  %v3808_v63 = vadd.f32 %v318_v50, %v3771_v52  ;;  %v320_v2 = vpop.f32.mrb[7].mxu1 }
 0x134   :  { %4271 = vst [vmem:[#allocation17_spill] sm:$0xff] %v3800_v29  ;;  %4272 = vst [vmem:[#allocation18_spill] sm:$0xff] %v3803_v45  ;;  %v3810_v5 = vadd.f32 %v247_v61, %v111_v59  ;;  %v3813_v6 = vadd.f32 %v320_v2, %v3779_v55 }
 0x135   :  { %4273 = vst [vmem:[#allocation19_spill] sm:$0xff] %v3805_v60  ;;  %4274 = vst [vmem:[#allocation20_spill] sm:$0xff] %v3808_v63 }
 0x136   :  { %4275 = vst [vmem:[#allocation21_spill] sm:$0xff] %v3810_v5  ;;  %4276 = vst [vmem:[#allocation22_spill] sm:$0xff] %v3813_v6 }
 0x138   :  { %v251_v48 = vpop.f32.mrb[8].mxu0  ;;  %v324_v8 = vpop.f32.mrb[8].mxu1 }
 0x139   :  { %v3815_v51 = vadd.f32 %v251_v48, %v107_v56  ;;  %v253_v47 = vpop.f32.mrb[9].mxu0  ;;  %v3818_v19 = vadd.f32 %v324_v8, %v3771_v52  ;;  %v326_v38 = vpop.f32.mrb[9].mxu1 }
 0x13a   :  { %v3820_v49 = vadd.f32 %v253_v47, %v111_v59  ;;  %v255_v0 = vpop.f32.mrb[10].mxu0  ;;  %v3823_v50 = vadd.f32 %v326_v38, %v3779_v55  ;;  %v328_v61 = vpop.f32.mrb[10].mxu1 }
 0x13b   :  { %4277 = vst [vmem:[#allocation23_spill] sm:$0xff] %v3815_v51  ;;  %4278 = vst [vmem:[#allocation24_spill] sm:$0xff] %v3818_v19  ;;  %v3825_v46 = vadd.f32 %v255_v0, %v107_v56  ;;  %v257_v2 = vpop.f32.mrb[11].mxu0  ;;  %v3828_v6 = vadd.f32 %v328_v61, %v3771_v52  ;;  %v330_v48 = vpop.f32.mrb[11].mxu1 }
 0x13c   :  { %4279 = vst [vmem:[#allocation25_spill] sm:$0xff] %v3820_v49  ;;  %4280 = vst [vmem:[#allocation26_spill] sm:$0xff] %v3823_v50  ;;  %v3830_v51 = vadd.f32 %v257_v2, %v111_v59  ;;  %v3833_v8 = vadd.f32 %v330_v48, %v3779_v55 }
 0x13d   :  { %4281 = vst [vmem:[#allocation27_spill] sm:$0xff] %v3825_v46  ;;  %4282 = vst [vmem:[#allocation28_spill] sm:$0xff] %v3828_v6 }
 0x13e   :  { %4283 = vst [vmem:[#allocation29_spill] sm:$0xff] %v3830_v51  ;;  %4284 = vst [vmem:[#allocation30_spill] sm:$0xff] %v3833_v8 }
 0x140   :  { %v261_v19 = vpop.f32.mrb[12].mxu0  ;;  %v334_v47 = vpop.f32.mrb[12].mxu1 }
 0x141   :  { %v3835_v49 = vadd.f32 %v261_v19, %v107_v56  ;;  %v263_v5 = vpop.f32.mrb[13].mxu0  ;;  %v3838_v38 = vadd.f32 %v334_v47, %v3771_v52  ;;  %v336_v0 = vpop.f32.mrb[13].mxu1 }
 0x142   :  { %v3840_v46 = vadd.f32 %v263_v5, %v111_v59  ;;  %v265_v50 = vpop.f32.mrb[14].mxu0  ;;  %v3843_v61 = vadd.f32 %v336_v0, %v3779_v55  ;;  %v338_v2 = vpop.f32.mrb[14].mxu1  ;;  %v232_v5 = vadd.f32 %v3773_v53, %v107_v56  ;;  %v234_v0 = vadd.f32 %v233_v57, %v111_v59 }
 0x143   :  { %4285 = vst [vmem:[#allocation31_spill] sm:$0xff] %v3835_v49  ;;  %4286 = vst [vmem:[#allocation32_spill] sm:$0xff] %v3838_v38  ;;  %v3845_v51 = vadd.f32 %v265_v50, %v107_v56  ;;  %v267_v48 = vpop.f32.mrb[15].mxu0  ;;  %v3848_v8 = vadd.f32 %v338_v2, %v3771_v52  ;;  %v340_v19 = vpop.f32.mrb[15].mxu1 }
 0x144   :  { %4287 = vst [vmem:[#allocation33_spill] sm:$0xff] %v3840_v46  ;;  %4288 = vst [vmem:[#allocation34_spill] sm:$0xff] %v3843_v61  ;;  %v3850_v49 = vadd.f32 %v267_v48, %v111_v59  ;;  %v3853_v47 = vadd.f32 %v340_v19, %v3779_v55  ;;  %v305_v46 = vadd.f32 %v3775_v54, %v3771_v52 }
 0x145   :  { %4289 = vst [vmem:[#allocation35_spill] sm:$0xff] %v3845_v51  ;;  %4290 = vst [vmem:[#allocation36_spill] sm:$0xff] %v3848_v8  ;;  %v307_v61 = vadd.f32 %v306_v58, %v3779_v55 }
 0x146   :  { %4291 = vst [vmem:[#allocation37_spill] sm:$0xff] %v3850_v49  ;;  %4292 = vst [vmem:[#allocation38_spill] sm:$0xff] %v3853_v47 }
 0x148   :  { %v608_v50 = vpop.f32.mrb[16].mxu0  ;;  %v649_v51 = vpop.f32.mrb[16].mxu1 }
 0x149   :  { %v656_v38 = vadd.f32 %v608_v50, %v232_v5  ;;  %v658_v6 = vadd.f32 %v649_v51, %v305_v46  ;;  %v610_v2 = vpop.f32.mrb[17].mxu0  ;;  %v651_v8 = vpop.f32.mrb[17].mxu1 }
 0x14a   :  { %v657_v63 = vadd.f32 %v610_v2, %v234_v0  ;;  %v659_v48 = vadd.f32 %v651_v8, %v307_v61  ;;  %v612_v49 = vpop.f32.mrb[18].mxu0  ;;  %v653_v60 = vpop.f32.mrb[18].mxu1 }
 0x14b   :  { %v660_v19 = vsub.f32 0.0, %v656_v38  ;;  %v613_v47 = vpop.f32.mrb[19].mxu0  ;;  %v654_v45 = vpop.f32.mrb[19].mxu1 }
 0x14c   :  { %v665_v53 = vsub.f32 0.0, %v657_v63  ;;  %v671_v52 = vsub.f32 0.0, %v659_v48 }
 0x14d   :  { %v661_v56 = vmul.f32 1.442695, %v660_v19 }
 0x14e   :  { %v666_v29 = vmul.f32 1.442695, %v665_v53  ;;  %v672_v54 = vmul.f32 1.442695, %v671_v52 }
 0x14f   :  { %3206 = vpow2.f32 %v661_v56 }
 0x150   :  { %3208 = vpow2.f32 %v666_v29 }
 0x151   :  { %3210 = vpow2.f32 %v672_v54 }
 0x152   :  { %3212 = vtanh.f32 %v658_v6  ;;  %v4293_v6 = vmov 0  }
 0x159   :  { %v3207_v55 = vpop.eup %3206 }
 0x15a   :  { %v3209_v57 = vpop.eup %3208  ;;  %v663_v58 = vadd.f32 1.0, %v3207_v55 }
 0x15b   :  { %v668_v46 = vadd.f32 1.0, %v3209_v57  ;;  %v3211_v49 = vpop.eup %3210 }
 0x15c   :  { %3214 = vrcp.f32 %v663_v58  ;;  %v3213_v51 = vpop.eup %3212  ;;  %v674_v63 = vadd.f32 1.0, %v3211_v49 }
 0x15d   :  { %3216 = vrcp.f32 %v668_v46 }
 0x15e   :  { %3218 = vrcp.f32 %v674_v63 }
 0x166   :  { %v3215_v59 = vpop.eup %3214 }
 0x167   :  { %v3217_v60 = vpop.eup %3216  ;;  %v677_v45 = vmul.f32 %v3215_v59, %v3213_v51 }
 0x168   :  { %v676_v8 = vmul.f32 0.0, %v3217_v60  ;;  %v3219_v29 = vpop.eup %3218 }
 0x16a   :  { %v3859_v38 = vadd.f32 %v677_v45, %v676_v8 }
 0x16c   :  { %3220 = vtanh.f32 %v3859_v38 }
 0x176   :  { %v3221_v61 = vpop.eup %3220 }
 0x177   :  { %v680_v47 = vmul.f32 %v3221_v61, %v3219_v29 }
 0x179   :  { %v688_v5 = vpack.c.bf16 %v680_v47, %v680_v47 }
 0x17b   :  { %722 = vmatmul.mubr.bf16.vlgmr.msra.gmra.mrb[20].mxu0 %v688_v5  ;;  %763 = vmatmul.mubr.bf16.vlgmr.msra.gmra.mrb[20].mxu1 %v688_v5 }
 0x17c   :  { %805 = vmatpush1.bf16.msra.mxu0 %v3605_v12  ;;  %846 = vmatpush1.bf16.msra.mxu1 %v3607_v13 }
 0x17d   :  { %806 = vmatprep.subr.bf16.mxu0 %v3610_v14  ;;  %847 = vmatprep.subr.bf16.mxu1 %v3613_v15 }
 0x17e   :  { %836 = vmatprep.mubr.bf16.mxu0 %v4293_v6  ;;  %877 = vmatprep.mubr.bf16.mxu1 %v4293_v6 }
 0x180   :  { %807 = vmatpush1.bf16.msra.mxu0 %v3617_v16  ;;  %848 = vmatpush1.bf16.msra.mxu1 %v3621_v17 }
 0x181   :  { %808 = vmatprep.subr.bf16.mxu0 %v3625_v18  ;;  %849 = vmatprep.subr.bf16.mxu1 %v3632_v20 }
 0x184   :  { %809 = vmatpush1.bf16.msra.mxu0 %v3634_v21  ;;  %850 = vmatpush1.bf16.msra.mxu1 %v3638_v22 }
 0x185   :  { %810 = vmatprep.subr.bf16.mxu0 %v3642_v23  ;;  %851 = vmatprep.subr.bf16.mxu1 %v3644_v24 }
 0x188   :  { %811 = vmatpush1.bf16.msra.mxu0 %v3648_v25  ;;  %852 = vmatpush1.bf16.msra.mxu1 %v3652_v26 }
 0x189   :  { %812 = vmatprep.subr.bf16.mxu0 %v3656_v27  ;;  %853 = vmatprep.subr.bf16.mxu1 %v3658_v28 }
 0x18c   :  { %813 = vmatpush1.bf16.msra.mxu0 %v3665_v30  ;;  %854 = vmatpush1.bf16.msra.mxu1 %v3667_v31 }
 0x18d   :  { %814 = vmatprep.subr.bf16.mxu0 %v3671_v32  ;;  %855 = vmatprep.subr.bf16.mxu1 %v3675_v33 }
 0x190   :  { %815 = vmatpush1.bf16.msra.mxu0 %v3679_v34  ;;  %856 = vmatpush1.bf16.msra.mxu1 %v3681_v35 }
 0x191   :  { %816 = vmatprep.subr.bf16.mxu0 %v3685_v36  ;;  %857 = vmatprep.subr.bf16.mxu1 %v3689_v37 }
 0x194   :  { %817 = vmatpush1.bf16.msra.mxu0 %v3696_v39  ;;  %858 = vmatpush1.bf16.msra.mxu1 %v3698_v40 }
 0x195   :  { %818 = vmatprep.subr.bf16.mxu0 %v3700_v41  ;;  %859 = vmatprep.subr.bf16.mxu1 %v3702_v42 }
 0x198   :  { %819 = vmatpush1.bf16.msra.mxu0 %v3708_v43  ;;  %860 = vmatpush1.bf16.msra.mxu1 %v3710_v44 }
 0x199   :  { %919 = vmatprep.subr.bf16.mxu0 %v3601_v10  ;;  %960 = vmatprep.subr.bf16.mxu1 %v3603_v11 }
 0x24e   :  { %v723_v0 = vpop.f32.mrb[20].mxu0  ;;  %v764_v50 = vpop.f32.mrb[20].mxu1 }
 0x24f   :  { %v771_v2 = vadd.f32 %v723_v0, %v3785_v62  ;;  %v773_v48 = vadd.f32 %v764_v50, %v3788_v1  ;;  %v725_v19 = vpop.f32.mrb[21].mxu0  ;;  %v766_v53 = vpop.f32.mrb[21].mxu1 }
 0x250   :  { %v772_v56 = vadd.f32 %v725_v19, %v3790_v3  ;;  %v774_v52 = vadd.f32 %v766_v53, %v3793_v4  ;;  %v727_v54 = vpop.f32.mrb[22].mxu0  ;;  %v768_v55 = vpop.f32.mrb[22].mxu1 }
 0x251   :  { %v775_v57 = vsub.f32 0.0, %v771_v2  ;;  %v728_v58 = vpop.f32.mrb[23].mxu0  ;;  %v769_v46 = vpop.f32.mrb[23].mxu1 }
 0x252   :  { %v780_v10 = vsub.f32 0.0, %v772_v56  ;;  %v786_v51 = vsub.f32 0.0, %v774_v52 }
 0x253   :  { %v776_v49 = vmul.f32 1.442695, %v775_v57 }
 0x254   :  { %v781_v11 = vmul.f32 1.442695, %v780_v10  ;;  %v787_v62 = vmul.f32 1.442695, %v786_v51 }
 0x255   :  { %3222 = vpow2.f32 %v776_v49 }
 0x256   :  { %3224 = vpow2.f32 %v781_v11 }
 0x257   :  { %3226 = vpow2.f32 %v787_v62 }
 0x258   :  { %3228 = vtanh.f32 %v773_v48 }
 0x25f   :  { %v3223_v59 = vpop.eup %3222 }
 0x260   :  { %v3225_v1 = vpop.eup %3224  ;;  %v778_v60 = vadd.f32 1.0, %v3223_v59 }
 0x261   :  { %v783_v3 = vadd.f32 1.0, %v3225_v1  ;;  %v3227_v4 = vpop.eup %3226 }
 0x262   :  { %3230 = vrcp.f32 %v778_v60  ;;  %v3229_v45 = vpop.eup %3228  ;;  %v789_v61 = vadd.f32 1.0, %v3227_v4 }
 0x263   :  { %3232 = vrcp.f32 %v783_v3 }
 0x264   :  { %3234 = vrcp.f32 %v789_v61  ;;  %v3964_v61 = vld [vmem:[#allocation6 + $0x20] ss:$16 sps:$4 sm:$0xff]  }
 0x26c   :  { %v3231_v63 = vpop.eup %3230 }
 0x26d   :  { %v3233_v8 = vpop.eup %3232  ;;  %v792_v29 = vmul.f32 %v3231_v63, %v3229_v45  ;;  %v3950_v45 = vld [vmem:[#allocation6] ss:$16 sps:$4 sm:$0xff]   ;;  %v3953_v63 = vld [vmem:[#allocation6 + $0x8] ss:$16 sps:$4 sm:$0xff]  }
 0x26e   :  { %v791_v47 = vmul.f32 %v3233_v8, %v3859_v38  ;;  %v3235_v0 = vpop.eup %3234  ;;  %v3956_v8 = vld [vmem:[#allocation6 + $0x24] ss:$16 sps:$4 sm:$0xff]  }
 0x270   :  { %v3901_v5 = vadd.f32 %v792_v29, %v791_v47  ;;  %v3959_v29 = vld [vmem:[#allocation6 + $0x2c] ss:$16 sps:$4 sm:$0xff]   ;;  %v3967_v47 = vld [vmem:[#allocation6 + $0x28] ss:$16 sps:$4 sm:$0xff]  }
 0x272   :  { %3236 = vtanh.f32 %v3901_v5 }
 0x27c   :  { %v3237_v50 = vpop.eup %3236 }
 0x27d   :  { %v795_v2 = vmul.f32 %v3237_v50, %v3235_v0  ;;  %v3973_v0 = vld [vmem:[#allocation6 + $0x4c] ss:$16 sps:$4 sm:$0xff]   ;;  %v3976_v50 = vld [vmem:[#allocation6 + $0x40] ss:$16 sps:$4 sm:$0xff]  }
 0x27f   :  { %v803_v48 = vpack.c.bf16 %v795_v2, %v795_v2  ;;  %v3979_v2 = vld [vmem:[#allocation6 + $0x48] ss:$16 sps:$4 sm:$0xff]  }
 0x281   :  { %837 = vmatmul.mubr.bf16.vlgmr.msra.gmra.mrb[24].mxu0 %v803_v48  ;;  %878 = vmatmul.mubr.bf16.vlgmr.msra.gmra.mrb[24].mxu1 %v803_v48  ;;  %v3982_v48 = vld [vmem:[#allocation6 + $0x64] ss:$16 sps:$4 sm:$0xff]  }
 0x282   :  { %920 = vmatpush1.bf16.msra.mxu0 %v3605_v12  ;;  %961 = vmatpush1.bf16.msra.mxu1 %v3607_v13  ;;  %v3936_v12 = vld [vmem:[#allocation6 + $0x4] ss:$16 sps:$4 sm:$0xff]   ;;  %v3939_v13 = vld [vmem:[#allocation6 + $0xc] ss:$16 sps:$4 sm:$0xff]  }
 0x283   :  { %921 = vmatprep.subr.bf16.mxu0 %v3610_v14  ;;  %962 = vmatprep.subr.bf16.mxu1 %v3613_v15 }
 0x284   :  { %951 = vmatprep.mubr.bf16.mxu0 %v4293_v6  ;;  %992 = vmatprep.mubr.bf16.mxu1 %v4293_v6 }
 0x286   :  { %922 = vmatpush1.bf16.msra.mxu0 %v3617_v16  ;;  %963 = vmatpush1.bf16.msra.mxu1 %v3621_v17 }
 0x287   :  { %923 = vmatprep.subr.bf16.mxu0 %v3625_v18  ;;  %964 = vmatprep.subr.bf16.mxu1 %v3632_v20 }
 0x28a   :  { %924 = vmatpush1.bf16.msra.mxu0 %v3634_v21  ;;  %965 = vmatpush1.bf16.msra.mxu1 %v3638_v22  ;;  %v4294_v21 = vld [vmem:[#allocation17_spill] sm:$0xff] }
 0x28b   :  { %925 = vmatprep.subr.bf16.mxu0 %v3642_v23  ;;  %966 = vmatprep.subr.bf16.mxu1 %v3644_v24  ;;  %v4295_v23 = vld [vmem:[#allocation18_spill] sm:$0xff] }
 0x28e   :  { %926 = vmatpush1.bf16.msra.mxu0 %v3648_v25  ;;  %967 = vmatpush1.bf16.msra.mxu1 %v3652_v26 }
 0x28f   :  { %927 = vmatprep.subr.bf16.mxu0 %v3656_v27  ;;  %968 = vmatprep.subr.bf16.mxu1 %v3658_v28 }
 0x292   :  { %928 = vmatpush1.bf16.msra.mxu0 %v3665_v30  ;;  %969 = vmatpush1.bf16.msra.mxu1 %v3667_v31 }
 0x293   :  { %929 = vmatprep.subr.bf16.mxu0 %v3671_v32  ;;  %970 = vmatprep.subr.bf16.mxu1 %v3675_v33 }
 0x296   :  { %930 = vmatpush1.bf16.msra.mxu0 %v3679_v34  ;;  %971 = vmatpush1.bf16.msra.mxu1 %v3681_v35 }
 0x297   :  { %931 = vmatprep.subr.bf16.mxu0 %v3685_v36  ;;  %972 = vmatprep.subr.bf16.mxu1 %v3689_v37 }
 0x29a   :  { %932 = vmatpush1.bf16.msra.mxu0 %v3696_v39  ;;  %973 = vmatpush1.bf16.msra.mxu1 %v3698_v40 }
 0x29b   :  { %933 = vmatprep.subr.bf16.mxu0 %v3700_v41  ;;  %974 = vmatprep.subr.bf16.mxu1 %v3702_v42 }
 0x29e   :  { %934 = vmatpush1.bf16.msra.mxu0 %v3708_v43  ;;  %975 = vmatpush1.bf16.msra.mxu1 %v3710_v44 }
 0x29f   :  { %1034 = vmatprep.subr.bf16.mxu0 %v3936_v12  ;;  %1075 = vmatprep.subr.bf16.mxu1 %v3939_v13 }
 0x354   :  { %v838_v14 = vpop.f32.mrb[24].mxu0  ;;  %v879_v15 = vpop.f32.mrb[24].mxu1 }
 0x355   :  { %v886_v16 = vadd.f32 %v838_v14, %v3795_v7  ;;  %v888_v17 = vadd.f32 %v879_v15, %v3798_v9  ;;  %v840_v18 = vpop.f32.mrb[25].mxu0  ;;  %v881_v20 = vpop.f32.mrb[25].mxu1  ;;  %v3985_v14 = vld [vmem:[#allocation6 + $0x6c] ss:$16 sps:$4 sm:$0xff]   ;;  %v3988_v15 = vld [vmem:[#allocation6 + $0x60] ss:$16 sps:$4 sm:$0xff]  }
 0x356   :  { %v887_v22 = vadd.f32 %v840_v18, %v4294_v21  ;;  %v889_v24 = vadd.f32 %v881_v20, %v4295_v23  ;;  %v842_v25 = vpop.f32.mrb[26].mxu0  ;;  %v883_v26 = vpop.f32.mrb[26].mxu1  ;;  %v3997_v18 = vld [vmem:[#allocation6 + $0x8c] ss:$16 sps:$4 sm:$0xff]  }
 0x357   :  { %v890_v27 = vsub.f32 0.0, %v886_v16  ;;  %v843_v28 = vpop.f32.mrb[27].mxu0  ;;  %v884_v38 = vpop.f32.mrb[27].mxu1  ;;  %v3991_v16 = vld [vmem:[#allocation6 + $0x68] ss:$16 sps:$4 sm:$0xff]  }
 0x358   :  { %v895_v19 = vsub.f32 0.0, %v887_v22  ;;  %v901_v52 = vsub.f32 0.0, %v889_v24 }
 0x359   :  { %v891_v53 = vmul.f32 1.442695, %v890_v27 }
 0x35a   :  { %v896_v56 = vmul.f32 1.442695, %v895_v19  ;;  %v902_v7 = vmul.f32 1.442695, %v901_v52 }
 0x35b   :  { %3238 = vpow2.f32 %v891_v53 }
 0x35c   :  { %3240 = vpow2.f32 %v896_v56 }
 0x35d   :  { %3242 = vpow2.f32 %v902_v7 }
 0x35e   :  { %3244 = vtanh.f32 %v888_v17  ;;  %v3994_v17 = vld [vmem:[#allocation6 + $0x84] ss:$16 sps:$4 sm:$0xff]  }
 0x365   :  { %v3239_v54 = vpop.eup %3238 }
 0x366   :  { %v3241_v9 = vpop.eup %3240  ;;  %v893_v55 = vadd.f32 1.0, %v3239_v54 }
 0x367   :  { %v898_v57 = vadd.f32 1.0, %v3241_v9  ;;  %v3243_v58 = vpop.eup %3242 }
 0x368   :  { %3246 = vrcp.f32 %v893_v55  ;;  %v3245_v46 = vpop.eup %3244  ;;  %v904_v51 = vadd.f32 1.0, %v3243_v58 }
 0x369   :  { %3248 = vrcp.f32 %v898_v57 }
 0x36a   :  { %3250 = vrcp.f32 %v904_v51  ;;  %v4042_v51 = vld [vmem:[#allocation6 + $0x80] ss:$16 sps:$4 sm:$0xff]  }
 0x372   :  { %v3247_v10 = vpop.eup %3246 }
 0x373   :  { %v3249_v49 = vpop.eup %3248  ;;  %v907_v11 = vmul.f32 %v3247_v10, %v3245_v46 }
 0x374   :  { %v906_v62 = vmul.f32 %v3249_v49, %v3901_v5  ;;  %v3251_v1 = vpop.eup %3250  ;;  %v3970_v5 = vld [vmem:[#allocation6 + $0x44] ss:$16 sps:$4 sm:$0xff]  }
 0x376   :  { %v3947_v59 = vadd.f32 %v907_v11, %v906_v62  ;;  %v4045_v62 = vld [vmem:[#allocation6 + $0x88] ss:$16 sps:$4 sm:$0xff]  }
 0x378   :  { %3252 = vtanh.f32 %v3947_v59 }
 0x382   :  { %v3253_v60 = vpop.eup %3252 }
 0x383   :  { %v910_v3 = vmul.f32 %v3253_v60, %v3251_v1  ;;  %v4051_v1 = vld [vmem:[#allocation6 + $0xac] ss:$16 sps:$4 sm:$0xff]   ;;  %v4054_v60 = vld [vmem:[#allocation6 + $0xa0] ss:$16 sps:$4 sm:$0xff]  }
 0x385   :  { %v918_v4 = vpack.c.bf16 %v910_v3, %v910_v3  ;;  %v4057_v3 = vld [vmem:[#allocation6 + $0xa8] ss:$16 sps:$4 sm:$0xff]  }
 0x387   :  { %952 = vmatmul.mubr.bf16.vlgmr.msra.gmra.mrb[28].mxu0 %v918_v4  ;;  %993 = vmatmul.mubr.bf16.vlgmr.msra.gmra.mrb[28].mxu1 %v918_v4  ;;  %v4060_v4 = vld [vmem:[#allocation6 + $0xc4] ss:$16 sps:$4 sm:$0xff]  }
 0x388   :  { %1035 = vmatpush1.bf16.msra.mxu0 %v3950_v45  ;;  %1076 = vmatpush1.bf16.msra.mxu1 %v3953_v63 }
 0x389   :  { %1036 = vmatprep.subr.bf16.mxu0 %v3956_v8  ;;  %1077 = vmatprep.subr.bf16.mxu1 %v3959_v29 }
 0x38a   :  { %1066 = vmatprep.mubr.bf16.mxu0 %v4293_v6  ;;  %1107 = vmatprep.mubr.bf16.mxu1 %v4293_v6 }
 0x38c   :  { %1037 = vmatpush1.bf16.msra.mxu0 %v3964_v61  ;;  %1078 = vmatpush1.bf16.msra.mxu1 %v3967_v47 }
 0x38d   :  { %1038 = vmatprep.subr.bf16.mxu0 %v3970_v5  ;;  %1079 = vmatprep.subr.bf16.mxu1 %v3973_v0 }
 0x390   :  { %1039 = vmatpush1.bf16.msra.mxu0 %v3976_v50  ;;  %1080 = vmatpush1.bf16.msra.mxu1 %v3979_v2 }
 0x391   :  { %1040 = vmatprep.subr.bf16.mxu0 %v3982_v48  ;;  %1081 = vmatprep.subr.bf16.mxu1 %v3985_v14 }
 0x394   :  { %1041 = vmatpush1.bf16.msra.mxu0 %v3988_v15  ;;  %1082 = vmatpush1.bf16.msra.mxu1 %v3991_v16 }
 0x395   :  { %1042 = vmatprep.subr.bf16.mxu0 %v3994_v17  ;;  %1083 = vmatprep.subr.bf16.mxu1 %v3997_v18 }
 0x398   :  { %1043 = vmatpush1.bf16.msra.mxu0 %v3665_v30  ;;  %1084 = vmatpush1.bf16.msra.mxu1 %v3667_v31 }
 0x399   :  { %1044 = vmatprep.subr.bf16.mxu0 %v3671_v32  ;;  %1085 = vmatprep.subr.bf16.mxu1 %v3675_v33  ;;  %v4296_v32 = vld [vmem:[#allocation19_spill] sm:$0xff] }
 0x39c   :  { %1045 = vmatpush1.bf16.msra.mxu0 %v3679_v34  ;;  %1086 = vmatpush1.bf16.msra.mxu1 %v3681_v35  ;;  %v4297_v34 = vld [vmem:[#allocation20_spill] sm:$0xff] }
 0x39d   :  { %1046 = vmatprep.subr.bf16.mxu0 %v3685_v36  ;;  %1087 = vmatprep.subr.bf16.mxu1 %v3689_v37 }
 0x3a0   :  { %1047 = vmatpush1.bf16.msra.mxu0 %v3696_v39  ;;  %1088 = vmatpush1.bf16.msra.mxu1 %v3698_v40  ;;  %v4298_v39 = vld [vmem:[#allocation21_spill] sm:$0xff] }
 0x3a1   :  { %1048 = vmatprep.subr.bf16.mxu0 %v3700_v41  ;;  %1089 = vmatprep.subr.bf16.mxu1 %v3702_v42  ;;  %v4299_v41 = vld [vmem:[#allocation22_spill] sm:$0xff] }
 0x3a4   :  { %1049 = vmatpush1.bf16.msra.mxu0 %v3708_v43  ;;  %1090 = vmatpush1.bf16.msra.mxu1 %v3710_v44 }
 0x3a5   :  { %1149 = vmatprep.subr.bf16.mxu0 %v3936_v12  ;;  %1190 = vmatprep.subr.bf16.mxu1 %v3939_v13 }
 0x45a   :  { %v953_v30 = vpop.f32.mrb[28].mxu0  ;;  %v994_v31 = vpop.f32.mrb[28].mxu1 }
 0x45b   :  { %v1001_v33 = vadd.f32 %v953_v30, %v4296_v32  ;;  %v1003_v35 = vadd.f32 %v994_v31, %v4297_v34  ;;  %v955_v36 = vpop.f32.mrb[29].mxu0  ;;  %v996_v37 = vpop.f32.mrb[29].mxu1  ;;  %v4063_v30 = vld [vmem:[#allocation6 + $0xcc] ss:$16 sps:$4 sm:$0xff]   ;;  %v4066_v31 = vld [vmem:[#allocation6 + $0xc0] ss:$16 sps:$4 sm:$0xff]  }
 0x45c   :  { %v1002_v40 = vadd.f32 %v955_v36, %v4298_v39  ;;  %v1004_v42 = vadd.f32 %v996_v37, %v4299_v41  ;;  %v957_v20 = vpop.f32.mrb[30].mxu0  ;;  %v998_v43 = vpop.f32.mrb[30].mxu1  ;;  %v4069_v32 = vld [vmem:[#allocation6 + $0xc8] ss:$16 sps:$4 sm:$0xff]   ;;  %v4075_v34 = vld [vmem:[#allocation6 + $0xec] ss:$16 sps:$4 sm:$0xff]  }
 0x45d   :  { %v1005_v21 = vsub.f32 0.0, %v1001_v33  ;;  %v958_v44 = vpop.f32.mrb[31].mxu0  ;;  %v999_v22 = vpop.f32.mrb[31].mxu1  ;;  %v4072_v33 = vld [vmem:[#allocation6 + $0xe4] ss:$16 sps:$4 sm:$0xff]  }
 0x45e   :  { %v1010_v23 = vsub.f32 0.0, %v1002_v40  ;;  %v1016_v26 = vsub.f32 0.0, %v1004_v42  ;;  %v4081_v36 = vld [vmem:[#allocation6 + $0xe8] ss:$16 sps:$4 sm:$0xff]   ;;  %v4300_v40 = vld [vmem:[#allocation23_spill] sm:$0xff]  ;;  %v4302_v44 = vld [vmem:[#allocation25_spill] sm:$0xff] }
 0x45f   :  { %v1006_v24 = vmul.f32 1.442695, %v1005_v21  ;;  %v4301_v42 = vld [vmem:[#allocation24_spill] sm:$0xff] }
 0x460   :  { %v1011_v25 = vmul.f32 1.442695, %v1010_v23  ;;  %v1017_v27 = vmul.f32 1.442695, %v1016_v26  ;;  %v4303_v23 = vld [vmem:[#allocation26_spill] sm:$0xff] }
 0x461   :  { %3254 = vpow2.f32 %v1006_v24 }
 0x462   :  { %3256 = vpow2.f32 %v1011_v25 }
 0x463   :  { %3258 = vpow2.f32 %v1017_v27 }
 0x464   :  { %3260 = vtanh.f32 %v1003_v35  ;;  %v4078_v35 = vld [vmem:[#allocation6 + $0xe0] ss:$16 sps:$4 sm:$0xff]  }
 0x46b   :  { %v3255_v28 = vpop.eup %3254 }
 0x46c   :  { %v3257_v38 = vpop.eup %3256  ;;  %v1008_v19 = vadd.f32 1.0, %v3255_v28 }
 0x46d   :  { %v1013_v53 = vadd.f32 1.0, %v3257_v38  ;;  %v3259_v56 = vpop.eup %3258 }
 0x46e   :  { %3262 = vrcp.f32 %v1008_v19  ;;  %v3261_v52 = vpop.eup %3260  ;;  %v1019_v55 = vadd.f32 1.0, %v3259_v56 }
 0x46f   :  { %3264 = vrcp.f32 %v1013_v53 }
 0x470   :  { %3266 = vrcp.f32 %v1019_v55 }
 0x478   :  { %v3263_v7 = vpop.eup %3262 }
 0x479   :  { %v3265_v54 = vpop.eup %3264  ;;  %v1022_v9 = vmul.f32 %v3263_v7, %v3261_v52 }
 0x47a   :  { %v1021_v57 = vmul.f32 %v3265_v54, %v3947_v59  ;;  %v3267_v46 = vpop.eup %3266  ;;  %v4048_v59 = vld [vmem:[#allocation6 + $0xa4] ss:$16 sps:$4 sm:$0xff]  }
 0x47c   :  { %v4021_v58 = vadd.f32 %v1022_v9, %v1021_v57 }
 0x47e   :  { %3268 = vtanh.f32 %v4021_v58 }
 0x488   :  { %v3269_v10 = vpop.eup %3268 }
 0x489   :  { %v1025_v49 = vmul.f32 %v3269_v10, %v3267_v46 }
 0x48b   :  { %v1033_v11 = vpack.c.bf16 %v1025_v49, %v1025_v49 }
 0x48d   :  { %1067 = vmatmul.mubr.bf16.vlgmr.msra.gmra.mrb[32].mxu0 %v1033_v11  ;;  %1108 = vmatmul.mubr.bf16.vlgmr.msra.gmra.mrb[32].mxu1 %v1033_v11 }
 0x48e   :  { %1150 = vmatpush1.bf16.msra.mxu0 %v3950_v45  ;;  %1191 = vmatpush1.bf16.msra.mxu1 %v3953_v63 }
 0x48f   :  { %1151 = vmatprep.subr.bf16.mxu0 %v3956_v8  ;;  %1192 = vmatprep.subr.bf16.mxu1 %v3959_v29 }
 0x490   :  { %1181 = vmatprep.mubr.bf16.mxu0 %v4293_v6  ;;  %1222 = vmatprep.mubr.bf16.mxu1 %v4293_v6 }
 0x492   :  { %1152 = vmatpush1.bf16.msra.mxu0 %v3964_v61  ;;  %1193 = vmatpush1.bf16.msra.mxu1 %v3967_v47 }
 0x493   :  { %1153 = vmatprep.subr.bf16.mxu0 %v3970_v5  ;;  %1194 = vmatprep.subr.bf16.mxu1 %v3973_v0 }
 0x496   :  { %1154 = vmatpush1.bf16.msra.mxu0 %v3976_v50  ;;  %1195 = vmatpush1.bf16.msra.mxu1 %v3979_v2 }
 0x497   :  { %1155 = vmatprep.subr.bf16.mxu0 %v3982_v48  ;;  %1196 = vmatprep.subr.bf16.mxu1 %v3985_v14 }
 0x49a   :  { %1156 = vmatpush1.bf16.msra.mxu0 %v3988_v15  ;;  %1197 = vmatpush1.bf16.msra.mxu1 %v3991_v16 }
 0x49b   :  { %1157 = vmatprep.subr.bf16.mxu0 %v3994_v17  ;;  %1198 = vmatprep.subr.bf16.mxu1 %v3997_v18 }
 0x49e   :  { %1158 = vmatpush1.bf16.msra.mxu0 %v4042_v51  ;;  %1199 = vmatpush1.bf16.msra.mxu1 %v4045_v62 }
 0x49f   :  { %1159 = vmatprep.subr.bf16.mxu0 %v4048_v59  ;;  %1200 = vmatprep.subr.bf16.mxu1 %v4051_v1 }
 0x4a2   :  { %1160 = vmatpush1.bf16.msra.mxu0 %v4054_v60  ;;  %1201 = vmatpush1.bf16.msra.mxu1 %v4057_v3 }
 0x4a3   :  { %1161 = vmatprep.subr.bf16.mxu0 %v4060_v4  ;;  %1202 = vmatprep.subr.bf16.mxu1 %v4063_v30 }
 0x4a6   :  { %1162 = vmatpush1.bf16.msra.mxu0 %v4066_v31  ;;  %1203 = vmatpush1.bf16.msra.mxu1 %v4069_v32 }
 0x4a7   :  { %1163 = vmatprep.subr.bf16.mxu0 %v4072_v33  ;;  %1204 = vmatprep.subr.bf16.mxu1 %v4075_v34 }
 0x4aa   :  { %1164 = vmatpush1.bf16.msra.mxu0 %v4078_v35  ;;  %1205 = vmatpush1.bf16.msra.mxu1 %v4081_v36 }
 0x4ab   :  { %1264 = vmatprep.subr.bf16.mxu0 %v3936_v12  ;;  %1305 = vmatprep.subr.bf16.mxu1 %v3939_v13 }
 0x560   :  { %v1068_v37 = vpop.f32.mrb[32].mxu0  ;;  %v1109_v39 = vpop.f32.mrb[32].mxu1 }
 0x561   :  { %v1116_v41 = vadd.f32 %v1068_v37, %v4300_v40  ;;  %v1118_v20 = vadd.f32 %v1109_v39, %v4301_v42  ;;  %v1070_v43 = vpop.f32.mrb[33].mxu0  ;;  %v1111_v21 = vpop.f32.mrb[33].mxu1 }
 0x562   :  { %v1117_v22 = vadd.f32 %v1070_v43, %v4302_v44  ;;  %v1119_v24 = vadd.f32 %v1111_v21, %v4303_v23  ;;  %v1072_v25 = vpop.f32.mrb[34].mxu0  ;;  %v1113_v26 = vpop.f32.mrb[34].mxu1 }
 0x563   :  { %v1120_v27 = vsub.f32 0.0, %v1116_v41  ;;  %v1073_v28 = vpop.f32.mrb[35].mxu0  ;;  %v1114_v38 = vpop.f32.mrb[35].mxu1 }
 0x564   :  { %v1125_v19 = vsub.f32 0.0, %v1117_v22  ;;  %v1131_v52 = vsub.f32 0.0, %v1119_v24  ;;  %v4304_v22 = vld [vmem:[#allocation27_spill] sm:$0xff]  ;;  %v4305_v24 = vld [vmem:[#allocation28_spill] sm:$0xff]  ;;  %v4306_v28 = vld [vmem:[#allocation29_spill] sm:$0xff] }
 0x565   :  { %v1121_v53 = vmul.f32 1.442695, %v1120_v27 }
 0x566   :  { %v1126_v56 = vmul.f32 1.442695, %v1125_v19  ;;  %v1132_v7 = vmul.f32 1.442695, %v1131_v52  ;;  %v4307_v19 = vld [vmem:[#allocation30_spill] sm:$0xff] }
 0x567   :  { %3270 = vpow2.f32 %v1121_v53 }
 0x568   :  { %3272 = vpow2.f32 %v1126_v56 }
 0x569   :  { %3274 = vpow2.f32 %v1132_v7 }
 0x56a   :  { %3276 = vtanh.f32 %v1118_v20 }
 0x571   :  { %v3271_v54 = vpop.eup %3270 }
 0x572   :  { %v3273_v9 = vpop.eup %3272  ;;  %v1123_v55 = vadd.f32 1.0, %v3271_v54 }
 0x573   :  { %v1128_v57 = vadd.f32 1.0, %v3273_v9  ;;  %v3275_v46 = vpop.eup %3274 }
 0x574   :  { %3278 = vrcp.f32 %v1123_v55  ;;  %v3277_v10 = vpop.eup %3276  ;;  %v1134_v39 = vadd.f32 1.0, %v3275_v46 }
 0x575   :  { %3280 = vrcp.f32 %v1128_v57 }
 0x576   :  { %3282 = vrcp.f32 %v1134_v39 }
 0x57e   :  { %v3279_v49 = vpop.eup %3278 }
 0x57f   :  { %v3281_v11 = vpop.eup %3280  ;;  %v1137_v37 = vmul.f32 %v3279_v49, %v3277_v10 }
 0x580   :  { %v1136_v40 = vmul.f32 %v3281_v11, %v4021_v58  ;;  %v3283_v42 = vpop.eup %3282 }
 0x582   :  { %v4091_v41 = vadd.f32 %v1137_v37, %v1136_v40 }
 0x584   :  { %3284 = vtanh.f32 %v4091_v41 }
 0x58e   :  { %v3285_v43 = vpop.eup %3284 }
 0x58f   :  { %v1140_v21 = vmul.f32 %v3285_v43, %v3283_v42 }
 0x591   :  { %v1148_v20 = vpack.c.bf16 %v1140_v21, %v1140_v21 }
 0x593   :  { %1182 = vmatmul.mubr.bf16.vlgmr.msra.gmra.mrb[36].mxu0 %v1148_v20  ;;  %1223 = vmatmul.mubr.bf16.vlgmr.msra.gmra.mrb[36].mxu1 %v1148_v20 }
 0x594   :  { %1265 = vmatpush1.bf16.msra.mxu0 %v3950_v45  ;;  %1306 = vmatpush1.bf16.msra.mxu1 %v3953_v63 }
 0x595   :  { %1266 = vmatprep.subr.bf16.mxu0 %v3956_v8  ;;  %1307 = vmatprep.subr.bf16.mxu1 %v3959_v29 }
 0x596   :  { %1296 = vmatprep.mubr.bf16.mxu0 %v4293_v6  ;;  %1337 = vmatprep.mubr.bf16.mxu1 %v4293_v6 }
 0x598   :  { %1267 = vmatpush1.bf16.msra.mxu0 %v3964_v61  ;;  %1308 = vmatpush1.bf16.msra.mxu1 %v3967_v47 }
 0x599   :  { %1268 = vmatprep.subr.bf16.mxu0 %v3970_v5  ;;  %1309 = vmatprep.subr.bf16.mxu1 %v3973_v0 }
 0x59c   :  { %1269 = vmatpush1.bf16.msra.mxu0 %v3976_v50  ;;  %1310 = vmatpush1.bf16.msra.mxu1 %v3979_v2 }
 0x59d   :  { %1270 = vmatprep.subr.bf16.mxu0 %v3982_v48  ;;  %1311 = vmatprep.subr.bf16.mxu1 %v3985_v14 }
 0x5a0   :  { %1271 = vmatpush1.bf16.msra.mxu0 %v3988_v15  ;;  %1312 = vmatpush1.bf16.msra.mxu1 %v3991_v16 }
 0x5a1   :  { %1272 = vmatprep.subr.bf16.mxu0 %v3994_v17  ;;  %1313 = vmatprep.subr.bf16.mxu1 %v3997_v18 }
 0x5a4   :  { %1273 = vmatpush1.bf16.msra.mxu0 %v4042_v51  ;;  %1314 = vmatpush1.bf16.msra.mxu1 %v4045_v62 }
 0x5a5   :  { %1274 = vmatprep.subr.bf16.mxu0 %v4048_v59  ;;  %1315 = vmatprep.subr.bf16.mxu1 %v4051_v1 }
 0x5a8   :  { %1275 = vmatpush1.bf16.msra.mxu0 %v4054_v60  ;;  %1316 = vmatpush1.bf16.msra.mxu1 %v4057_v3 }
 0x5a9   :  { %1276 = vmatprep.subr.bf16.mxu0 %v4060_v4  ;;  %1317 = vmatprep.subr.bf16.mxu1 %v4063_v30 }
 0x5ac   :  { %1277 = vmatpush1.bf16.msra.mxu0 %v4066_v31  ;;  %1318 = vmatpush1.bf16.msra.mxu1 %v4069_v32 }
 0x5ad   :  { %1278 = vmatprep.subr.bf16.mxu0 %v4072_v33  ;;  %1319 = vmatprep.subr.bf16.mxu1 %v4075_v34 }
 0x5b0   :  { %1279 = vmatpush1.bf16.msra.mxu0 %v4078_v35  ;;  %1320 = vmatpush1.bf16.msra.mxu1 %v4081_v36 }
 0x5b1   :  { %1379 = vmatprep.subr.bf16.mxu0 %v3936_v12  ;;  %1420 = vmatprep.subr.bf16.mxu1 %v3939_v13 }
 0x666   :  { %v1183_v58 = vpop.f32.mrb[36].mxu0  ;;  %v1224_v44 = vpop.f32.mrb[36].mxu1 }
 0x667   :  { %v1231_v23 = vadd.f32 %v1183_v58, %v4304_v22  ;;  %v1233_v25 = vadd.f32 %v1224_v44, %v4305_v24  ;;  %v1185_v26 = vpop.f32.mrb[37].mxu0  ;;  %v1226_v27 = vpop.f32.mrb[37].mxu1 }
 0x668   :  { %v1232_v38 = vadd.f32 %v1185_v26, %v4306_v28  ;;  %v1234_v53 = vadd.f32 %v1226_v27, %v4307_v19  ;;  %v1187_v56 = vpop.f32.mrb[38].mxu0  ;;  %v1228_v52 = vpop.f32.mrb[38].mxu1 }
 0x669   :  { %v1235_v7 = vsub.f32 0.0, %v1231_v23  ;;  %v1188_v54 = vpop.f32.mrb[39].mxu0  ;;  %v1229_v9 = vpop.f32.mrb[39].mxu1  ;;  %v1487_v52 = vld [vmem:[#allocation8] sm:$0xff] }
 0x66a   :  { %v1240_v12 = vsub.f32 0.0, %v1232_v38  ;;  %v1246_v57 = vsub.f32 0.0, %v1234_v53  ;;  %v1488_v54 = vld [vmem:[#allocation8 + $0x8] sm:$0xff] }
 0x66b   :  { %v1236_v55 = vmul.f32 1.442695, %v1235_v7  ;;  %v1491_v7 = vld [vmem:[#allocation8 + $0x20] sm:$0xff] }
 0x66c   :  { %v1241_v13 = vmul.f32 1.442695, %v1240_v12  ;;  %v1247_v46 = vmul.f32 1.442695, %v1246_v57  ;;  %v2850_v9 = vcombine.high %v1487_v52, %v1491_v7  ;;  %v1492_v12 = vld [vmem:[#allocation8 + $0x28] sm:$0xff] }
 0x66d   :  { %3286 = vpow2.f32 %v1236_v55  ;;  %v2849_v55 = vcombine.low %v1487_v52, %v1491_v7  ;;  %v2852_v57 = vcombine.high %v1488_v54, %v1492_v12 }
 0x66e   :  { %3288 = vpow2.f32 %v1241_v13  ;;  %v2851_v13 = vcombine.low %v1488_v54, %v1492_v12 }
 0x66f   :  { %3290 = vpow2.f32 %v1247_v46  ;;  %v1495_v46 = vld [vmem:[#allocation8 + $0x40] sm:$0xff] }
 0x670   :  { %3292 = vtanh.f32 %v1233_v25 }
 0x677   :  { %v3287_v10 = vpop.eup %3286 }
 0x678   :  { %v3289_v49 = vpop.eup %3288  ;;  %v1238_v11 = vadd.f32 1.0, %v3287_v10  ;;  %v1499_v10 = vld [vmem:[#allocation8 + $0x60] sm:$0xff] }
 0x679   :  { %v1243_v37 = vadd.f32 1.0, %v3289_v49  ;;  %v3291_v39 = vpop.eup %3290  ;;  %v1496_v49 = vld [vmem:[#allocation8 + $0x48] sm:$0xff] }
 0x67a   :  { %3294 = vrcp.f32 %v1238_v11  ;;  %v3293_v40 = vpop.eup %3292  ;;  %v1249_v20 = vadd.f32 1.0, %v3291_v39  ;;  %v2858_v11 = vcombine.high %v1495_v46, %v1499_v10  ;;  %v2857_v39 = vcombine.low %v1495_v46, %v1499_v10 }
 0x67b   :  { %3296 = vrcp.f32 %v1243_v37  ;;  %v1500_v37 = vld [vmem:[#allocation8 + $0x68] sm:$0xff] }
 0x67c   :  { %3298 = vrcp.f32 %v1249_v20  ;;  %v1504_v20 = vld [vmem:[#allocation8 + $0x88] sm:$0xff] }
 0x684   :  { %v3295_v42 = vpop.eup %3294 }
 0x685   :  { %v3297_v43 = vpop.eup %3296  ;;  %v1252_v21 = vmul.f32 %v3295_v42, %v3293_v40  ;;  %v2859_v40 = vcombine.low %v1496_v49, %v1500_v37  ;;  %v2860_v42 = vcombine.high %v1496_v49, %v1500_v37  ;;  %v4312_v37 = vld [vmem:[#allocation35_spill] sm:$0xff] }
 0x686   :  { %v1251_v58 = vmul.f32 %v3297_v43, %v4091_v41  ;;  %v3299_v22 = vpop.eup %3298  ;;  %v1503_v43 = vld [vmem:[#allocation8 + $0x80] sm:$0xff] }
 0x688   :  { %v4133_v44 = vadd.f32 %v1252_v21, %v1251_v58  ;;  %v1507_v21 = vld [vmem:[#allocation8 + $0xa0] sm:$0xff] }
 0x689   :  { %v2866_v58 = vcombine.high %v1503_v43, %v1507_v21 }
 0x68a   :  { %3300 = vtanh.f32 %v4133_v44 }
 0x694   :  { %v3301_v23 = vpop.eup %3300 }
 0x695   :  { %v1255_v24 = vmul.f32 %v3301_v23, %v3299_v22  ;;  %v2865_v22 = vcombine.low %v1503_v43, %v1507_v21 }
 0x697   :  { %v1263_v25 = vpack.c.bf16 %v1255_v24, %v1255_v24 }
 0x699   :  { %1297 = vmatmul.mubr.bf16.vlgmr.msra.gmra.mrb[40].mxu0 %v1263_v25  ;;  %1338 = vmatmul.mubr.bf16.vlgmr.msra.gmra.mrb[40].mxu1 %v1263_v25  ;;  %v1511_v25 = vld [vmem:[#allocation8 + $0xc0] sm:$0xff] }
 0x69a   :  { %1380 = vmatpush1.bf16.msra.mxu0 %v3950_v45  ;;  %1421 = vmatpush1.bf16.msra.mxu1 %v3953_v63 }
 0x69b   :  { %1381 = vmatprep.subr.bf16.mxu0 %v3956_v8  ;;  %1422 = vmatprep.subr.bf16.mxu1 %v3959_v29  ;;  %v4308_v8 = vld [vmem:[#allocation31_spill] sm:$0xff] }
 0x69c   :  { %1411 = vmatprep.mubr.bf16.mxu0 %v4293_v6  ;;  %1452 = vmatprep.mubr.bf16.mxu1 %v4293_v6 }
 0x69e   :  { %1382 = vmatpush1.bf16.msra.mxu0 %v3964_v61  ;;  %1423 = vmatpush1.bf16.msra.mxu1 %v3967_v47  ;;  %v4309_v61 = vld [vmem:[#allocation32_spill] sm:$0xff] }
 0x69f   :  { %1383 = vmatprep.subr.bf16.mxu0 %v3970_v5  ;;  %1424 = vmatprep.subr.bf16.mxu1 %v3973_v0 }
 0x6a2   :  { %1384 = vmatpush1.bf16.msra.mxu0 %v3976_v50  ;;  %1425 = vmatpush1.bf16.msra.mxu1 %v3979_v2  ;;  %v4310_v50 = vld [vmem:[#allocation33_spill] sm:$0xff] }
 0x6a3   :  { %1385 = vmatprep.subr.bf16.mxu0 %v3982_v48  ;;  %1426 = vmatprep.subr.bf16.mxu1 %v3985_v14  ;;  %v4311_v48 = vld [vmem:[#allocation34_spill] sm:$0xff] }
 0x6a6   :  { %1386 = vmatpush1.bf16.msra.mxu0 %v3988_v15  ;;  %1427 = vmatpush1.bf16.msra.mxu1 %v3991_v16 }
 0x6a7   :  { %1387 = vmatprep.subr.bf16.mxu0 %v3994_v17  ;;  %1428 = vmatprep.subr.bf16.mxu1 %v3997_v18 }
 0x6aa   :  { %1388 = vmatpush1.bf16.msra.mxu0 %v4042_v51  ;;  %1429 = vmatpush1.bf16.msra.mxu1 %v4045_v62 }
 0x6ab   :  { %1389 = vmatprep.subr.bf16.mxu0 %v4048_v59  ;;  %1430 = vmatprep.subr.bf16.mxu1 %v4051_v1 }
 0x6ae   :  { %1390 = vmatpush1.bf16.msra.mxu0 %v4054_v60  ;;  %1431 = vmatpush1.bf16.msra.mxu1 %v4057_v3 }
 0x6af   :  { %1391 = vmatprep.subr.bf16.mxu0 %v4060_v4  ;;  %1432 = vmatprep.subr.bf16.mxu1 %v4063_v30 }
 0x6b2   :  { %1392 = vmatpush1.bf16.msra.mxu0 %v4066_v31  ;;  %1433 = vmatpush1.bf16.msra.mxu1 %v4069_v32 }
 0x6b3   :  { %1393 = vmatprep.subr.bf16.mxu0 %v4072_v33  ;;  %1434 = vmatprep.subr.bf16.mxu1 %v4075_v34 }
 0x6b6   :  { %1394 = vmatpush1.bf16.msra.mxu0 %v4078_v35  ;;  %1435 = vmatpush1.bf16.msra.mxu1 %v4081_v36 }
 0x6b7   :  { %1913 = vmatprep.subr.bf16.mxu0 %v2850_v9  ;;  %1954 = vmatprep.subr.bf16.mxu1 %v2852_v57  ;;  %v4186_v9 = vld [vmem:[#allocation8 + $0x38] sm:$0xff] }
 0x76c   :  { %v1298_v45 = vpop.f32.mrb[40].mxu0  ;;  %v1339_v63 = vpop.f32.mrb[40].mxu1 }
 0x76d   :  { %v1346_v29 = vadd.f32 %v1298_v45, %v4308_v8  ;;  %v1348_v47 = vadd.f32 %v1339_v63, %v4309_v61  ;;  %v1300_v5 = vpop.f32.mrb[41].mxu0  ;;  %v1341_v0 = vpop.f32.mrb[41].mxu1  ;;  %v1515_v45 = vld [vmem:[#allocation8 + $0xe0] sm:$0xff]  ;;  %v1512_v63 = vld [vmem:[#allocation8 + $0xc8] sm:$0xff] }
 0x76e   :  { %v1347_v2 = vadd.f32 %v1300_v5, %v4310_v50  ;;  %v1349_v14 = vadd.f32 %v1341_v0, %v4311_v48  ;;  %v1302_v15 = vpop.f32.mrb[42].mxu0  ;;  %v1343_v16 = vpop.f32.mrb[42].mxu1  ;;  %v2874_v8 = vcombine.high %v1511_v25, %v1515_v45  ;;  %v2873_v61 = vcombine.low %v1511_v25, %v1515_v45  ;;  %v1519_v0 = vld [vmem:[#allocation8 + $0x100] sm:$0xff] }
 0x76f   :  { %v1350_v17 = vsub.f32 0.0, %v1346_v29  ;;  %v1303_v18 = vpop.f32.mrb[43].mxu0  ;;  %v1344_v51 = vpop.f32.mrb[43].mxu1  ;;  %v1516_v29 = vld [vmem:[#allocation8 + $0xe8] sm:$0xff]  ;;  %v1523_v50 = vld [vmem:[#allocation8 + $0x120] sm:$0xff] }
 0x770   :  { %v1355_v62 = vsub.f32 0.0, %v1347_v2  ;;  %v1361_v60 = vsub.f32 0.0, %v1349_v14  ;;  %v2876_v5 = vcombine.high %v1512_v63, %v1516_v29  ;;  %v1520_v2 = vld [vmem:[#allocation8 + $0x108] sm:$0xff]  ;;  %v2882_v48 = vcombine.high %v1519_v0, %v1523_v50  ;;  %v1527_v18 = vld [vmem:[#allocation8 + $0x140] sm:$0xff] }
 0x771   :  { %v1351_v59 = vmul.f32 1.442695, %v1350_v17  ;;  %v1524_v14 = vld [vmem:[#allocation8 + $0x128] sm:$0xff]  ;;  %v2881_v15 = vcombine.low %v1519_v0, %v1523_v50  ;;  %v1531_v51 = vld [vmem:[#allocation8 + $0x160] sm:$0xff] }
 0x772   :  { %v1356_v1 = vmul.f32 1.442695, %v1355_v62  ;;  %v1362_v3 = vmul.f32 1.442695, %v1361_v60  ;;  %v2883_v16 = vcombine.low %v1520_v2, %v1524_v14  ;;  %v2884_v17 = vcombine.high %v1520_v2, %v1524_v14  ;;  %v1528_v62 = vld [vmem:[#allocation8 + $0x148] sm:$0xff] }
 0x773   :  { %3302 = vpow2.f32 %v1351_v59  ;;  %v2889_v59 = vcombine.low %v1527_v18, %v1531_v51  ;;  %v1532_v60 = vld [vmem:[#allocation8 + $0x168] sm:$0xff] }
 0x774   :  { %3304 = vpow2.f32 %v1356_v1  ;;  %v2890_v1 = vcombine.high %v1527_v18, %v1531_v51 }
 0x775   :  { %3306 = vpow2.f32 %v1362_v3  ;;  %v1535_v3 = vld [vmem:[#allocation8 + $0x180] sm:$0xff] }
 0x776   :  { %3308 = vtanh.f32 %v1348_v47  ;;  %v2875_v47 = vcombine.low %v1512_v63, %v1516_v29 }
 0x77d   :  { %v3303_v4 = vpop.eup %3302 }
 0x77e   :  { %v3305_v30 = vpop.eup %3304  ;;  %v1353_v31 = vadd.f32 1.0, %v3303_v4  ;;  %v1539_v4 = vld [vmem:[#allocation8 + $0x1a0] sm:$0xff] }
 0x77f   :  { %v1358_v32 = vadd.f32 1.0, %v3305_v30  ;;  %v3307_v33 = vpop.eup %3306  ;;  %v2891_v30 = vcombine.low %v1528_v62, %v1532_v60 }
 0x780   :  { %3310 = vrcp.f32 %v1353_v31  ;;  %v3309_v34 = vpop.eup %3308  ;;  %v1364_v26 = vadd.f32 1.0, %v3307_v33  ;;  %v2892_v31 = vcombine.high %v1528_v62, %v1532_v60  ;;  %v1536_v33 = vld [vmem:[#allocation8 + $0x188] sm:$0xff]  ;;  %v1497_v60 = vld [vmem:[#allocation8 + $0x50] sm:$0xff] }
 0x781   :  { %3312 = vrcp.f32 %v1358_v32  ;;  %v2898_v32 = vcombine.high %v1535_v3, %v1539_v4 }
 0x782   :  { %3314 = vrcp.f32 %v1364_v26  ;;  %v1544_v26 = vld [vmem:[#allocation8 + $0x1c8] sm:$0xff] }
 0x78a   :  { %v3311_v35 = vpop.eup %3310 }
 0x78b   :  { %v3313_v36 = vpop.eup %3312  ;;  %v1367_v41 = vmul.f32 %v3311_v35, %v3309_v34  ;;  %v1540_v34 = vld [vmem:[#allocation8 + $0x1a8] sm:$0xff]  ;;  %v1543_v35 = vld [vmem:[#allocation8 + $0x1c0] sm:$0xff] }
 0x78c   :  { %v1366_v27 = vmul.f32 %v3313_v36, %v4133_v44  ;;  %v3315_v38 = vpop.eup %3314  ;;  %v1508_v44 = vld [vmem:[#allocation8 + $0xa8] sm:$0xff]  ;;  %v2900_v36 = vcombine.high %v1536_v33, %v1540_v34  ;;  %v2899_v52 = vcombine.low %v1536_v33, %v1540_v34 }
 0x78d   :  { %v2867_v23 = vcombine.low %v1504_v20, %v1508_v44  ;;  %v2868_v24 = vcombine.high %v1504_v20, %v1508_v44  ;;  %v4314_v20 = vld [vmem:[#allocation37_spill] sm:$0xff]  ;;  %v4315_v44 = vld [vmem:[#allocation38_spill] sm:$0xff] }
 0x78e   :  { %v4173_v28 = vadd.f32 %v1367_v41, %v1366_v27  ;;  %v1547_v41 = vld [vmem:[#allocation8 + $0x1e0] sm:$0xff]  ;;  %v1548_v27 = vld [vmem:[#allocation8 + $0x1e8] sm:$0xff] }
 0x78f   :  { %v2906_v7 = vcombine.high %v1543_v35, %v1547_v41  ;;  %v2908_v12 = vcombine.high %v1544_v26, %v1548_v27  ;;  %v2907_v57 = vcombine.low %v1544_v26, %v1548_v27  ;;  %v1506_v26 = vld [vmem:[#allocation8 + $0x98] sm:$0xff] }
 0x790   :  { %3316 = vtanh.f32 %v4173_v28  ;;  %v1510_v27 = vld [vmem:[#allocation8 + $0xb8] sm:$0xff] }
 0x79a   :  { %v3317_v19 = vpop.eup %3316 }
 0x79b   :  { %v1370_v53 = vmul.f32 %v3317_v19, %v3315_v38  ;;  %v2897_v38 = vcombine.low %v1535_v3, %v1539_v4  ;;  %v4178_v19 = vld [vmem:[#allocation8 + $0x10] sm:$0xff] }
 0x79c   :  { %v1501_v4 = vld [vmem:[#allocation8 + $0x70] sm:$0xff] }
 0x79d   :  { %v1378_v56 = vpack.c.bf16 %v1370_v53, %v1370_v53  ;;  %v4180_v53 = vld [vmem:[#allocation8 + $0x30] sm:$0xff]  ;;  %v2862_v34 = vcombine.high %v1497_v60, %v1501_v4 }
 0x79e   :  { %v2853_v54 = vcombine.low %v4178_v19, %v4180_v53  ;;  %v2854_v46 = vcombine.high %v4178_v19, %v4180_v53  ;;  %v2871_v53 = vcombine.low %v1506_v26, %v1510_v27 }
 0x79f   :  { %1412 = vmatmul.mubr.bf16.vlgmr.msra.gmra.mrb[44].mxu0 %v1378_v56  ;;  %1453 = vmatmul.mubr.bf16.vlgmr.msra.gmra.mrb[44].mxu1 %v1378_v56  ;;  %v4182_v56 = vld [vmem:[#allocation8 + $0x18] sm:$0xff] }
 0x7a0   :  { %1945 = vmatprep.mubr.bf16.mxu0 %v4293_v6  ;;  %1986 = vmatprep.mubr.bf16.mxu1 %v4293_v6  ;;  %v2856_v10 = vcombine.high %v4182_v56, %v4186_v9 }
 0x7a1   :  { %1914 = vmatpush1.bf16.msra.mxu0 %v2849_v55  ;;  %1955 = vmatpush1.bf16.msra.mxu1 %v2851_v13  ;;  %v2855_v55 = vcombine.low %v4182_v56, %v4186_v9  ;;  %v2905_v13 = vcombine.low %v1543_v35, %v1547_v41  ;;  %v1509_v41 = vld [vmem:[#allocation8 + $0xb0] sm:$0xff] }
 0x7a2   :  { %1915 = vmatprep.subr.bf16.mxu0 %v2858_v11  ;;  %1956 = vmatprep.subr.bf16.mxu1 %v2860_v42  ;;  %v1521_v9 = vld [vmem:[#allocation8 + $0x110] sm:$0xff] }
 0x7a5   :  { %1916 = vmatpush1.bf16.msra.mxu0 %v2857_v39  ;;  %1957 = vmatpush1.bf16.msra.mxu1 %v2859_v40  ;;  %v4313_v40 = vld [vmem:[#allocation36_spill] sm:$0xff] }
 0x7a6   :  { %1917 = vmatprep.subr.bf16.mxu0 %v2866_v58  ;;  %1958 = vmatprep.subr.bf16.mxu1 %v2868_v24 }
 0x7a9   :  { %1918 = vmatpush1.bf16.msra.mxu0 %v2865_v22  ;;  %1959 = vmatpush1.bf16.msra.mxu1 %v2867_v23 }
 0x7aa   :  { %1919 = vmatprep.subr.bf16.mxu0 %v2874_v8  ;;  %1960 = vmatprep.subr.bf16.mxu1 %v2876_v5 }
 0x7ad   :  { %1920 = vmatpush1.bf16.msra.mxu0 %v2873_v61  ;;  %1961 = vmatpush1.bf16.msra.mxu1 %v2875_v47 }
 0x7ae   :  { %1921 = vmatprep.subr.bf16.mxu0 %v2882_v48  ;;  %1962 = vmatprep.subr.bf16.mxu1 %v2884_v17 }
 0x7b1   :  { %1922 = vmatpush1.bf16.msra.mxu0 %v2881_v15  ;;  %1963 = vmatpush1.bf16.msra.mxu1 %v2883_v16 }
 0x7b2   :  { %1923 = vmatprep.subr.bf16.mxu0 %v2890_v1  ;;  %1964 = vmatprep.subr.bf16.mxu1 %v2892_v31  ;;  %v1502_v31 = vld [vmem:[#allocation8 + $0x78] sm:$0xff] }
 0x7b5   :  { %1924 = vmatpush1.bf16.msra.mxu0 %v2889_v59  ;;  %1965 = vmatpush1.bf16.msra.mxu1 %v2891_v30  ;;  %v1498_v30 = vld [vmem:[#allocation8 + $0x58] sm:$0xff] }
 0x7b6   :  { %1925 = vmatprep.subr.bf16.mxu0 %v2898_v32  ;;  %1966 = vmatprep.subr.bf16.mxu1 %v2900_v36  ;;  %v2864_v35 = vcombine.high %v1498_v30, %v1502_v31  ;;  %v1505_v36 = vld [vmem:[#allocation8 + $0x90] sm:$0xff] }
 0x7b7   :  { %v2869_v19 = vcombine.low %v1505_v36, %v1509_v41 }
 0x7b9   :  { %1926 = vmatpush1.bf16.msra.mxu0 %v2897_v38  ;;  %1967 = vmatpush1.bf16.msra.mxu1 %v2899_v52  ;;  %v2863_v38 = vcombine.low %v1498_v30, %v1502_v31  ;;  %v2870_v52 = vcombine.high %v1505_v36, %v1509_v41  ;;  %v3150_v30 = vld [vmem:[#allocation9 + $0x50] sm:$0xff]   ;;  %v3155_v36 = vld [vmem:[#allocation9 + $0xd8] sm:$0xff]  }
 0x7ba   :  { %1927 = vmatprep.subr.bf16.mxu0 %v2906_v7  ;;  %1968 = vmatprep.subr.bf16.mxu1 %v2908_v12  ;;  %v2872_v7 = vcombine.high %v1506_v26, %v1510_v27  ;;  %v1513_v12 = vld [vmem:[#allocation8 + $0xd0] sm:$0xff]  ;;  %v3156_v41 = vld [vmem:[#allocation9 + $0x18] sm:$0xff]   ;;  %v3158_v26 = vld [vmem:[#allocation9 + $0x60] sm:$0xff]  }
 0x7bb   :  { %v3151_v31 = vld [vmem:[#allocation9 + $0xd0] sm:$0xff]   ;;  %v3159_v27 = vld [vmem:[#allocation9 + $0xe0] sm:$0xff]  }
 0x7bd   :  { %1928 = vmatpush1.bf16.msra.mxu0 %v2905_v13  ;;  %1969 = vmatpush1.bf16.msra.mxu1 %v2907_v57  ;;  %v1517_v13 = vld [vmem:[#allocation8 + $0xf0] sm:$0xff]  ;;  %v1514_v57 = vld [vmem:[#allocation8 + $0xd8] sm:$0xff] }
 0x7be   :  { %1995 = vmatprep.subr.bf16.mxu0 %v2854_v46  ;;  %2036 = vmatprep.subr.bf16.mxu1 %v2856_v10  ;;  %v1518_v46 = vld [vmem:[#allocation8 + $0xf8] sm:$0xff]  ;;  %v2878_v56 = vcombine.high %v1513_v12, %v1517_v13 }
 0x7bf   :  { %v1522_v10 = vld [vmem:[#allocation8 + $0x118] sm:$0xff] }
 0x872   :  { %v1413_v49 = vpop.f32.mrb[44].mxu0  ;;  %v1454_v11 = vpop.f32.mrb[44].mxu1 }
 0x873   :  { %v1461_v39 = vadd.f32 %v1413_v49, %v4312_v37  ;;  %v1463_v42 = vadd.f32 %v1454_v11, %v4313_v40  ;;  %v1415_v43 = vpop.f32.mrb[45].mxu0  ;;  %v1456_v21 = vpop.f32.mrb[45].mxu1  ;;  %v1526_v49 = vld [vmem:[#allocation8 + $0x138] sm:$0xff]  ;;  %v2877_v11 = vcombine.low %v1513_v12, %v1517_v13  ;;  %v2879_v37 = vcombine.low %v1514_v57, %v1518_v46  ;;  %v1529_v40 = vld [vmem:[#allocation8 + $0x150] sm:$0xff]  ;;  %v3164_v12 = vld [vmem:[#allocation9 + $0x28] sm:$0xff]  }
 0x874   :  { %v1462_v58 = vadd.f32 %v1415_v43, %v4314_v20  ;;  %v1464_v22 = vadd.f32 %v1456_v21, %v4315_v44  ;;  %v1417_v23 = vpop.f32.mrb[46].mxu0  ;;  %v1458_v24 = vpop.f32.mrb[46].mxu1  ;;  %v1530_v43 = vld [vmem:[#allocation8 + $0x158] sm:$0xff]  ;;  %v3165_v13 = vld [vmem:[#allocation9 + $0xa8] sm:$0xff]  }
 0x875   :  { %v1465_v25 = vsub.f32 0.0, %v1461_v39  ;;  %v1418_v45 = vpop.f32.mrb[47].mxu0  ;;  %v1459_v63 = vpop.f32.mrb[47].mxu1  ;;  %v1534_v21 = vld [vmem:[#allocation8 + $0x178] sm:$0xff]  ;;  %v1537_v23 = vld [vmem:[#allocation8 + $0x190] sm:$0xff] }
 0x876   :  { %v1470_v8 = vsub.f32 0.0, %v1462_v58  ;;  %v1476_v47 = vsub.f32 0.0, %v1464_v22  ;;  %v2887_v58 = vcombine.low %v1522_v10, %v1526_v49  ;;  %v2896_v22 = vcombine.high %v1530_v43, %v1534_v21  ;;  %v1541_v24 = vld [vmem:[#allocation8 + $0x1b0] sm:$0xff]  ;;  %v1542_v45 = vld [vmem:[#allocation8 + $0x1b8] sm:$0xff] }
 0x877   :  { %v1466_v29 = vmul.f32 1.442695, %v1465_v25  ;;  %v1538_v25 = vld [vmem:[#allocation8 + $0x198] sm:$0xff] }
 0x878   :  { %v1471_v61 = vmul.f32 1.442695, %v1470_v8  ;;  %v1477_v5 = vmul.f32 1.442695, %v1476_v47  ;;  %v2895_v8 = vcombine.low %v1530_v43, %v1534_v21  ;;  %v1545_v47 = vld [vmem:[#allocation8 + $0x1d0] sm:$0xff] }
 0x879   :  { %3318 = vpow2.f32 %v1466_v29  ;;  %v2902_v29 = vcombine.high %v1537_v23, %v1541_v24 }
 0x87a   :  { %3320 = vpow2.f32 %v1471_v61  ;;  %v2904_v61 = vcombine.high %v1538_v25, %v1542_v45 }
 0x87b   :  { %3322 = vpow2.f32 %v1477_v5  ;;  %v1549_v5 = vld [vmem:[#allocation8 + $0x1f0] sm:$0xff] }
 0x87c   :  { %3324 = vtanh.f32 %v1463_v42  ;;  %v1533_v42 = vld [vmem:[#allocation8 + $0x170] sm:$0xff] }
 0x87d   :  { %v2894_v44 = vcombine.high %v1529_v40, %v1533_v42  ;;  %v2893_v63 = vcombine.low %v1529_v40, %v1533_v42 }
 0x883   :  { %v3319_v0 = vpop.eup %3318 }
 0x884   :  { %v3321_v50 = vpop.eup %3320  ;;  %v1468_v2 = vadd.f32 1.0, %v3319_v0  ;;  %v1546_v0 = vld [vmem:[#allocation8 + $0x1d8] sm:$0xff] }
 0x885   :  { %v1473_v48 = vadd.f32 1.0, %v3321_v50  ;;  %v3323_v14 = vpop.eup %3322  ;;  %v1550_v50 = vld [vmem:[#allocation8 + $0x1f8] sm:$0xff] }
 0x886   :  { %3326 = vrcp.f32 %v1468_v2  ;;  %v3325_v15 = vpop.eup %3324  ;;  %v1479_v51 = vadd.f32 1.0, %v3323_v14  ;;  %v2901_v2 = vcombine.low %v1537_v23, %v1541_v24  ;;  %v2910_v14 = vcombine.high %v1545_v47, %v1549_v5 }
 0x887   :  { %3328 = vrcp.f32 %v1473_v48  ;;  %v2903_v48 = vcombine.low %v1538_v25, %v1542_v45 }
 0x888   :  { %3330 = vrcp.f32 %v1479_v51  ;;  %v3143_v51 = vld [vmem:[#allocation9 + $0xc0] sm:$0xff]  }
 0x890   :  { %v3327_v16 = vpop.eup %3326 }
 0x891   :  { %v3329_v17 = vpop.eup %3328  ;;  %v1482_v18 = vmul.f32 %v3327_v16, %v3325_v15  ;;  %v2912_v15 = vcombine.high %v1546_v0, %v1550_v50  ;;  %v2909_v16 = vcombine.low %v1545_v47, %v1549_v5 }
 0x892   :  { %v1481_v62 = vmul.f32 %v3329_v17, %v4173_v28  ;;  %v3331_v1 = vpop.eup %3330  ;;  %v2861_v28 = vcombine.low %v1497_v60, %v1501_v4  ;;  %v2911_v17 = vcombine.low %v1546_v0, %v1550_v50  ;;  %v3147_v60 = vld [vmem:[#allocation9 + $0xc8] sm:$0xff]  }
 0x893   :  { %v3149_v4 = vld [vmem:[#allocation9 + $0x88] sm:$0xff]  }
 0x894   :  { %v1483_v59 = vadd.f32 %v1482_v18, %v1481_v62  ;;  %v3142_v18 = vld [vmem:[#allocation9 + $0x40] sm:$0xff]  }
 0x895   :  { %v3144_v62 = vld [vmem:[#allocation9] sm:$0xff]  }
 0x896   :  { %3332 = vtanh.f32 %v1483_v59  ;;  %v3145_v59 = vld [vmem:[#allocation9 + $0x80] sm:$0xff]  }
 0x8a0   :  { %v3333_v3 = vpop.eup %3332 }
 0x8a1   :  { %v1485_v32 = vmul.f32 %v3333_v3, %v3331_v1  ;;  %v3146_v1 = vld [vmem:[#allocation9 + $0x48] sm:$0xff]  }
 0x8a2   :  { %v3148_v3 = vld [vmem:[#allocation9 + $0x8] sm:$0xff]  }
 0x8a3   :  { %v4199_v33 = vpack.c.bf16 %v1485_v32, %v1485_v32  ;;  %v3152_v32 = vld [vmem:[#allocation9 + $0x10] sm:$0xff]  }
 0x8a5   :  { %1946 = vmatmul.mubr.bf16.vlgmr.msra.gmra.mrb[48].mxu0 %v4199_v33  ;;  %1987 = vmatmul.mubr.bf16.vlgmr.msra.gmra.mrb[48].mxu1 %v4199_v33 }
 0x8a6   :  { %1996 = vmatpush1.bf16.msra.mxu0 %v2853_v54  ;;  %2037 = vmatpush1.bf16.msra.mxu1 %v2855_v55  ;;  %v2880_v54 = vcombine.high %v1514_v57, %v1518_v46  ;;  %v1525_v55 = vld [vmem:[#allocation8 + $0x130] sm:$0xff] }
 0x8a7   :  { %1997 = vmatprep.subr.bf16.mxu0 %v2862_v34  ;;  %2038 = vmatprep.subr.bf16.mxu1 %v2864_v35  ;;  %v2886_v39 = vcombine.high %v1521_v9, %v1525_v55  ;;  %v2885_v20 = vcombine.low %v1521_v9, %v1525_v55  ;;  %v3153_v34 = vld [vmem:[#allocation9 + $0x90] sm:$0xff]   ;;  %v3154_v35 = vld [vmem:[#allocation9 + $0x58] sm:$0xff]  }
 0x8a8   :  { %2027 = vmatprep.mubr.bf16.mxu0 %v4293_v6  ;;  %2068 = vmatprep.mubr.bf16.mxu1 %v4293_v6  ;;  %v2888_v6 = vcombine.high %v1522_v10, %v1526_v49  ;;  %v3166_v57 = vld [vmem:[#allocation9 + $0x70] sm:$0xff]   ;;  %v3172_v9 = vld [vmem:[#allocation9 + $0x38] sm:$0xff]   ;;  %v3174_v10 = vld [vmem:[#allocation9 + $0x140] sm:$0xff]  }
 0x8a9   :  { %v3167_v46 = vld [vmem:[#allocation9 + $0xf0] sm:$0xff]   ;;  %v3173_v55 = vld [vmem:[#allocation9 + $0xb8] sm:$0xff]   ;;  %v3175_v49 = vld [vmem:[#allocation9 + $0x1c0] sm:$0xff]  }
 0x8aa   :  { %1998 = vmatpush1.bf16.msra.mxu0 %v2861_v28  ;;  %2039 = vmatpush1.bf16.msra.mxu1 %v2863_v38  ;;  %v3160_v28 = vld [vmem:[#allocation9 + $0x20] sm:$0xff]  }
 0x8ab   :  { %1999 = vmatprep.subr.bf16.mxu0 %v2870_v52  ;;  %2040 = vmatprep.subr.bf16.mxu1 %v2872_v7  ;;  %v3161_v38 = vld [vmem:[#allocation9 + $0xa0] sm:$0xff]   ;;  %v3162_v52 = vld [vmem:[#allocation9 + $0x68] sm:$0xff]  }
 0x8ac   :  { %v3163_v7 = vld [vmem:[#allocation9 + $0xe8] sm:$0xff]  }
 0x8ae   :  { %2000 = vmatpush1.bf16.msra.mxu0 %v2869_v19  ;;  %2041 = vmatpush1.bf16.msra.mxu1 %v2871_v53  ;;  %v3168_v19 = vld [vmem:[#allocation9 + $0x30] sm:$0xff]  }
 0x8af   :  { %2001 = vmatprep.subr.bf16.mxu0 %v2878_v56  ;;  %2042 = vmatprep.subr.bf16.mxu1 %v2880_v54  ;;  %v3169_v53 = vld [vmem:[#allocation9 + $0xb0] sm:$0xff]   ;;  %v3170_v56 = vld [vmem:[#allocation9 + $0x78] sm:$0xff]  }
 0x8b0   :  { %v3171_v54 = vld [vmem:[#allocation9 + $0xf8] sm:$0xff]  }
 0x8b2   :  { %2002 = vmatpush1.bf16.msra.mxu0 %v2877_v11  ;;  %2043 = vmatpush1.bf16.msra.mxu1 %v2879_v37  ;;  %v4216_v11 = vld [vmem:[%s4258_s5] sm:$0xff]  ;;  %v4316_v37 = vld [vmem:[#allocation16_spill] sm:$0xff] }
 0x8b3   :  { %2003 = vmatprep.subr.bf16.mxu0 %v2886_v39  ;;  %2044 = vmatprep.subr.bf16.mxu1 %v2888_v6  ;;  %v4317_v39 = vsub.s32 0, %v4316_v37  ;;  %v4318_v40 = vsub.s32 2, %v4316_v37  ;;  %v4319_v43 = vsub.s32 1, %v4316_v37 }
 0x8b5   :  { %v1556_v6 = vrot.slane %v4216_v11, %v4317_v39  ;;  %v1564_v42 = vrot.slane %v4216_v11, %v4318_v40  ;;  %v1560_v21 = vrot.slane %v4216_v11, %v4319_v43  ;;  %v3202_v39 = vld [vmem:[#allocation9 + $0x178] sm:$0xff]  }
 0x8b6   :  { %2004 = vmatpush1.bf16.msra.mxu0 %v2885_v20  ;;  %2045 = vmatpush1.bf16.msra.mxu1 %v2887_v58  ;;  %v4320_v20 = vsub.s32 3, %v4316_v37 }
 0x8b7   :  { %2005 = vmatprep.subr.bf16.mxu0 %v2894_v44  ;;  %2046 = vmatprep.subr.bf16.mxu1 %v2896_v22 }
 0x8b8   :  { %v1568_v58 = vrot.slane %v4216_v11, %v4320_v20 }
 0x8ba   :  { %2006 = vmatpush1.bf16.msra.mxu0 %v2893_v63  ;;  %2047 = vmatpush1.bf16.msra.mxu1 %v2895_v8 }
 0x8bb   :  { %2007 = vmatprep.subr.bf16.mxu0 %v2902_v29  ;;  %2048 = vmatprep.subr.bf16.mxu1 %v2904_v61 }
 0x8be   :  { %2008 = vmatpush1.bf16.msra.mxu0 %v2901_v2  ;;  %2049 = vmatpush1.bf16.msra.mxu1 %v2903_v48 }
 0x8bf   :  { %2009 = vmatprep.subr.bf16.mxu0 %v2910_v14  ;;  %2050 = vmatprep.subr.bf16.mxu1 %v2912_v15 }
 0x8c2   :  { %2010 = vmatpush1.bf16.msra.mxu0 %v2909_v16  ;;  %2051 = vmatpush1.bf16.msra.mxu1 %v2911_v17  ;;  %v3176_v16 = vld [vmem:[#allocation9 + $0x100] sm:$0xff]  }
 0x8c3   :  { %2978 = vmatprep.subr.bf16.mxu0 %v3142_v18  ;;  %3000 = vmatprep.subr.bf16.mxu1 %v3143_v51  ;;  %v3177_v17 = vld [vmem:[#allocation9 + $0x180] sm:$0xff]  }
 0x8c5   :  { %2028 = vmatmul.mubr.bf16.vlgmr.msra.gmra.mrb[52].mxu0 %v4199_v33  ;;  %2069 = vmatmul.mubr.bf16.vlgmr.msra.gmra.mrb[52].mxu1 %v4199_v33  ;;  %v3157_v33 = vld [vmem:[#allocation9 + $0x98] sm:$0xff]  }
 0x8c6   :  { %2979 = vmatpush3.bf16.msra.mxu0 %v3144_v62  ;;  %3001 = vmatpush3.bf16.msra.mxu1 %v3145_v59  ;;  %v3178_v62 = vld [vmem:[#allocation9 + $0x148] sm:$0xff]  }
 0x8c7   :  { %2980 = vmatprep.subr.bf16.mxu0 %v3146_v1  ;;  %3002 = vmatprep.subr.bf16.mxu1 %v3147_v60  ;;  %v3179_v59 = vld [vmem:[#allocation9 + $0x1c8] sm:$0xff]  }
 0x8c8   :  { %v3180_v1 = vld [vmem:[#allocation9 + $0x108] sm:$0xff]  }
 0x8c9   :  { %v3181_v60 = vld [vmem:[#allocation9 + $0x188] sm:$0xff]  }
 0x8ca   :  { %2981 = vmatpush3.bf16.msra.mxu0 %v3148_v3  ;;  %3003 = vmatpush3.bf16.msra.mxu1 %v3149_v4  ;;  %v3182_v3 = vld [vmem:[#allocation9 + $0x150] sm:$0xff]  }
 0x8cb   :  { %2982 = vmatprep.subr.bf16.mxu0 %v3150_v30  ;;  %3004 = vmatprep.subr.bf16.mxu1 %v3151_v31  ;;  %v3183_v4 = vld [vmem:[#allocation9 + $0x1d0] sm:$0xff]  }
 0x8cc   :  { %v3184_v30 = vld [vmem:[#allocation9 + $0x110] sm:$0xff]  }
 0x8cd   :  { %v3185_v31 = vld [vmem:[#allocation9 + $0x190] sm:$0xff]  }
 0x8ce   :  { %2983 = vmatpush3.bf16.msra.mxu0 %v3152_v32  ;;  %3005 = vmatpush3.bf16.msra.mxu1 %v3153_v34  ;;  %v3186_v32 = vld [vmem:[#allocation9 + $0x158] sm:$0xff]  }
 0x8cf   :  { %2984 = vmatprep.subr.bf16.mxu0 %v3154_v35  ;;  %3006 = vmatprep.subr.bf16.mxu1 %v3155_v36  ;;  %v3187_v34 = vld [vmem:[#allocation9 + $0x1d8] sm:$0xff]  }
 0x8d0   :  { %v3188_v35 = vld [vmem:[#allocation9 + $0x118] sm:$0xff]  }
 0x8d1   :  { %v3189_v36 = vld [vmem:[#allocation9 + $0x198] sm:$0xff]  }
 0x8d2   :  { %2985 = vmatpush3.bf16.msra.mxu0 %v3156_v41  ;;  %3007 = vmatpush3.bf16.msra.mxu1 %v3157_v33  ;;  %v3190_v41 = vld [vmem:[#allocation9 + $0x160] sm:$0xff]  }
 0x8d3   :  { %2986 = vmatprep.subr.bf16.mxu0 %v3158_v26  ;;  %3008 = vmatprep.subr.bf16.mxu1 %v3159_v27  ;;  %v3191_v33 = vld [vmem:[#allocation9 + $0x1e0] sm:$0xff]  }
 0x8d4   :  { %v3192_v26 = vld [vmem:[#allocation9 + $0x120] sm:$0xff]  }
 0x8d5   :  { %v3193_v27 = vld [vmem:[#allocation9 + $0x1a0] sm:$0xff]  }
 0x8d6   :  { %2987 = vmatpush3.bf16.msra.mxu0 %v3160_v28  ;;  %3009 = vmatpush3.bf16.msra.mxu1 %v3161_v38  ;;  %v3194_v28 = vld [vmem:[#allocation9 + $0x168] sm:$0xff]  }
 0x8d7   :  { %2988 = vmatprep.subr.bf16.mxu0 %v3162_v52  ;;  %3010 = vmatprep.subr.bf16.mxu1 %v3163_v7  ;;  %v3195_v38 = vld [vmem:[#allocation9 + $0x1e8] sm:$0xff]   ;;  %v1571_v52 = vsub.s32 4, %v4316_v37  ;;  %v1579_v7 = vsub.s32 6, %v4316_v37 }
 0x8da   :  { %2989 = vmatpush3.bf16.msra.mxu0 %v3164_v12  ;;  %3011 = vmatpush3.bf16.msra.mxu1 %v3165_v13  ;;  %v3196_v12 = vld [vmem:[#allocation9 + $0x128] sm:$0xff]  }
 0x8db   :  { %2990 = vmatprep.subr.bf16.mxu0 %v3166_v57  ;;  %3012 = vmatprep.subr.bf16.mxu1 %v3167_v46  ;;  %v3197_v13 = vld [vmem:[#allocation9 + $0x1a8] sm:$0xff]   ;;  %v1575_v57 = vsub.s32 5, %v4316_v37  ;;  %v1583_v46 = vsub.s32 7, %v4316_v37  ;;  %v3203_v37 = vld [vmem:[#allocation9 + $0x1f8] sm:$0xff]  }
 0x8de   :  { %2991 = vmatpush3.bf16.msra.mxu0 %v3168_v19  ;;  %3013 = vmatpush3.bf16.msra.mxu1 %v3169_v53  ;;  %v3198_v19 = vld [vmem:[#allocation9 + $0x170] sm:$0xff]  }
 0x8df   :  { %2992 = vmatprep.subr.bf16.mxu0 %v3170_v56  ;;  %3014 = vmatprep.subr.bf16.mxu1 %v3171_v54  ;;  %v3199_v53 = vld [vmem:[#allocation9 + $0x1f0] sm:$0xff]   ;;  %v1572_v56 = vrot.slane %v4216_v11, %v1571_v52  ;;  %v1580_v54 = vrot.slane %v4216_v11, %v1579_v7 }
 0x8e2   :  { %2993 = vmatpush3.bf16.msra.mxu0 %v3172_v9  ;;  %3015 = vmatpush3.bf16.msra.mxu1 %v3173_v55  ;;  %v1576_v9 = vrot.slane %v4216_v11, %v1575_v57  ;;  %v1584_v55 = vrot.slane %v4216_v11, %v1583_v46  ;;  %v3205_v11 = vld [vmem:[#allocation9 + $0x1b8] sm:$0xff]  }
 0x8e3   :  { %3022 = vmatprep.subr.bf16.mxu0 %v3174_v10  ;;  %3044 = vmatprep.subr.bf16.mxu1 %v3175_v49  ;;  %v3200_v10 = vld [vmem:[#allocation9 + $0x130] sm:$0xff]  }
 0x8e4   :  { %v3201_v49 = vld [vmem:[#allocation9 + $0x1b0] sm:$0xff]  }
 0x978   :  { %v1947_v44 = vpop.f32.mrb[48].mxu0  ;;  %v1988_v22 = vpop.f32.mrb[48].mxu1 }
 0x979   :  { %v1948_v23 = vadd.f32 %v1947_v44, %v1556_v6  ;;  %v1989_v24 = vadd.f32 %v1988_v22, %v1564_v42  ;;  %v1949_v25 = vpop.f32.mrb[49].mxu0  ;;  %v1990_v45 = vpop.f32.mrb[49].mxu1 }
 0x97a   :  { %v1950_v63 = vadd.f32 %v1949_v25, %v1560_v21  ;;  %v1991_v8 = vadd.f32 %v1990_v45, %v1568_v58  ;;  %v1951_v29 = vpop.f32.mrb[50].mxu0  ;;  %v1992_v61 = vpop.f32.mrb[50].mxu1 }
 0x97b   :  { %v2077_v47 = vmax.f32 %v1948_v23, 0.0  ;;  %v2079_v5 = vmax.f32 %v1989_v24, 0.0  ;;  %v1952_v0 = vpop.f32.mrb[51].mxu0  ;;  %v1993_v50 = vpop.f32.mrb[51].mxu1  ;;  %v3204_v24 = vld [vmem:[#allocation9 + $0x138] sm:$0xff]  }
 0x97c   :  { %v2078_v2 = vmax.f32 %v1950_v63, 0.0  ;;  %v2080_v48 = vmax.f32 %v1991_v8, 0.0 }
 0x97d   :  { %v2085_v18 = vpack.c.bf16 %v2077_v47, %v2077_v47  ;;  %v2087_v51 = vpack.c.bf16 %v2079_v5, %v2079_v5 }
 0x97e   :  { %v2086_v14 = vpack.c.bf16 %v2078_v2, %v2078_v2  ;;  %v2088_v15 = vpack.c.bf16 %v2080_v48, %v2080_v48 }
 0x980   :  { %2644 = vmatprep.mubr.bf16.mxu0 %v2086_v14  ;;  %2684 = vmatprep.mubr.bf16.mxu1 %v2088_v15  ;;  %v2913_v14 = vld [vmem:[%s4260_s7] ss:$0 sm:$0xff]  ;;  %s3495_s7 = smov [#allocation11]  }
 0x981   :  { %2645 = vmatmul.mubr.bf16.vlgmr.msra.gmra.mrb[56].mxu0 %v2085_v18  ;;  %2685 = vmatmul.mubr.bf16.vlgmr.msra.gmra.mrb[56].mxu1 %v2087_v51  ;;  %s2779_s18 = sshll.u32 %s3495_s7, 4  ;;  %s2780_s18 = int_to_ptr.vmem [resolvable:$true] %s2779_s18 }
 0x982   :  { %3023 = vmatpush3.bf16.msra.mxu0 %v3176_v16  ;;  %3045 = vmatpush3.bf16.msra.mxu1 %v3177_v17  ;;  %s3454_s21 = scalar_lea.vmem %s2780_s18, 128  ;;  %p3459_p5 = scmp.lt.s32.totalorder %s2780_s18, %s2780_s18 }
 0x983   :  { %3024 = vmatprep.subr.bf16.mxu0 %v3178_v62  ;;  %3046 = vmatprep.subr.bf16.mxu1 %v3179_v59  ;;  %p3455_p4 = scmp.ne.s32.totalorder %s2780_s18, %s3454_s21  ;;  %p3460_p6 = scmp.lt.s32.totalorder %s3454_s21, %s3454_s21 }
 0x985   :  { %p3461_p7 = por %p3460_p6, %p3459_p5 }
 0x986   :  { %3025 = vmatpush3.bf16.msra.mxu0 %v3180_v1  ;;  %3047 = vmatpush3.bf16.msra.mxu1 %v3181_v60 }
 0x987   :  { %3026 = vmatprep.subr.bf16.mxu0 %v3182_v3  ;;  %3048 = vmatprep.subr.bf16.mxu1 %v3183_v4  ;;  %p3462_p8 = pnand %p3461_p7, %p3455_p4 }
 0x98a   :  { %3027 = vmatpush3.bf16.msra.mxu0 %v3184_v30  ;;  %3049 = vmatpush3.bf16.msra.mxu1 %v3185_v31 }
 0x98b   :  { %3028 = vmatprep.subr.bf16.mxu0 %v3186_v32  ;;  %3050 = vmatprep.subr.bf16.mxu1 %v3187_v34 }
 0x98e   :  { %3029 = vmatpush3.bf16.msra.mxu0 %v3188_v35  ;;  %3051 = vmatpush3.bf16.msra.mxu1 %v3189_v36 }
 0x98f   :  { %3030 = vmatprep.subr.bf16.mxu0 %v3190_v41  ;;  %3052 = vmatprep.subr.bf16.mxu1 %v3191_v33 }
 0x992   :  { %3031 = vmatpush3.bf16.msra.mxu0 %v3192_v26  ;;  %3053 = vmatpush3.bf16.msra.mxu1 %v3193_v27 }
 0x993   :  { %3032 = vmatprep.subr.bf16.mxu0 %v3194_v28  ;;  %3054 = vmatprep.subr.bf16.mxu1 %v3195_v38 }
 0x996   :  { %3033 = vmatpush3.bf16.msra.mxu0 %v3196_v12  ;;  %3055 = vmatpush3.bf16.msra.mxu1 %v3197_v13 }
 0x997   :  { %3034 = vmatprep.subr.bf16.mxu0 %v3198_v19  ;;  %3056 = vmatprep.subr.bf16.mxu1 %v3199_v53 }
 0x998   :  { %v2029_v6 = vpop.f32.mrb[52].mxu0  ;;  %v2070_v40 = vpop.f32.mrb[52].mxu1 }
 0x999   :  { %v2030_v42 = vadd.f32 %v2029_v6, %v1572_v56  ;;  %v2071_v43 = vadd.f32 %v2070_v40, %v1580_v54  ;;  %v2031_v21 = vpop.f32.mrb[53].mxu0  ;;  %v2072_v20 = vpop.f32.mrb[53].mxu1 }
 0x99a   :  { %v2032_v58 = vadd.f32 %v2031_v21, %v1576_v9  ;;  %v2073_v44 = vadd.f32 %v2072_v20, %v1584_v55  ;;  %v2033_v22 = vpop.f32.mrb[54].mxu0  ;;  %v2074_v23 = vpop.f32.mrb[54].mxu1  ;;  %3035 = vmatpush3.bf16.msra.mxu0 %v3200_v10  ;;  %3057 = vmatpush3.bf16.msra.mxu1 %v3201_v49 }
 0x99b   :  { %v2081_v25 = vmax.f32 %v2030_v42, 0.0  ;;  %v2083_v45 = vmax.f32 %v2071_v43, 0.0  ;;  %v2034_v63 = vpop.f32.mrb[55].mxu0  ;;  %v2075_v8 = vpop.f32.mrb[55].mxu1  ;;  %3036 = vmatprep.subr.bf16.mxu0 %v3202_v39  ;;  %3058 = vmatprep.subr.bf16.mxu1 %v3203_v37 }
 0x99c   :  { %v2082_v29 = vmax.f32 %v2032_v58, 0.0  ;;  %v2084_v61 = vmax.f32 %v2073_v44, 0.0 }
 0x99d   :  { %v2089_v0 = vpack.c.bf16 %v2081_v25, %v2081_v25  ;;  %v2091_v50 = vpack.c.bf16 %v2083_v45, %v2083_v45 }
 0x99e   :  { %v2090_v47 = vpack.c.bf16 %v2082_v29, %v2082_v29  ;;  %v2092_v5 = vpack.c.bf16 %v2084_v61, %v2084_v61  ;;  %3037 = vmatpush3.bf16.msra.mxu0 %v3204_v24  ;;  %3059 = vmatpush3.bf16.msra.mxu1 %v3205_v11 }
 0x9a0   :  { %2724 = vmatprep.mubr.bf16.mxu0 %v2090_v47  ;;  %2764 = vmatprep.mubr.bf16.mxu1 %v2092_v5 }
 0x9a1   :  { %2725 = vmatmul.mubr.bf16.vlgmr.msra.gmra.mrb[60].mxu0 %v2089_v0  ;;  %2765 = vmatmul.mubr.bf16.vlgmr.msra.gmra.mrb[60].mxu1 %v2091_v50 }
 0xa54   :  { %v2994_v2 = vpop.f32.mrb[56].mxu0  ;;  %v3016_v48 = vpop.f32.mrb[56].mxu1 }
 0xa55   :  { %v2995_v15 = vpop.f32.mrb[57].mxu0  ;;  %v3017_v16 = vpop.f32.mrb[57].mxu1 }
 0xa56   :  { %v2996_v17 = vadd.f32 %v2995_v15, %v2994_v2  ;;  %v3018_v18 = vadd.f32 %v3017_v16, %v3016_v48  ;;  %v2997_v51 = vpop.f32.mrb[58].mxu0  ;;  %v3019_v62 = vpop.f32.mrb[58].mxu1 }
 0xa57   :  { %v2998_v59 = vpop.f32.mrb[59].mxu0  ;;  %v3020_v1 = vpop.f32.mrb[59].mxu1 }
 0xa58   :  { %v2647_v60 = vadd.f32 %v2996_v17, %v2913_v14 }
 0xa5a   :  { %v2687_v3 = vadd.f32 %v3018_v18, %v2647_v60 }
 0xa74   :  { %v3038_v4 = vpop.f32.mrb[60].mxu0  ;;  %v3060_v30 = vpop.f32.mrb[60].mxu1 }
 0xa75   :  { %v3039_v31 = vpop.f32.mrb[61].mxu0  ;;  %v3061_v32 = vpop.f32.mrb[61].mxu1 }
 0xa76   :  { %v3040_v34 = vadd.f32 %v3039_v31, %v3038_v4  ;;  %v3062_v35 = vadd.f32 %v3061_v32, %v3060_v30  ;;  %v3041_v36 = vpop.f32.mrb[62].mxu0  ;;  %v3063_v41 = vpop.f32.mrb[62].mxu1 }
 0xa77   :  { %v3042_v33 = vpop.f32.mrb[63].mxu0  ;;  %v3064_v26 = vpop.f32.mrb[63].mxu1 }
 0xa78   :  { %v2727_v27 = vadd.f32 %v3040_v34, %v2687_v3 }
 0xa7a   :  { %v2767_v28 = vadd.f32 %v3062_v35, %v2727_v27 }
 0xa7c   :  { %2772 = vst [vmem:[#allocation11] sm:$0xff] %v2767_v28 }
 0xa7d   :  { %3465 = shalt.err (!%p3462_p8)
}
 0xa7e   :  { %s3466_s24 = scalar_lea.hbm %s4261_s8, 128 }
 0xa7f   :  { %p3467_p9 = scmp.ne.s32.totalorder %s4261_s8, %s3466_s24  ;;  %p3470_p10 = scmp.lt.u32.totalorder %s3466_s24, %s4261_s8 }
 0xa81   :  { %p3472_p11 = pnand %p3470_p10, %p3467_p9 }
 0xa83   :  { %3475 = shalt.err (!%p3472_p11)
}
 0xa84   :  { %2782 = dma.vmem_to_hbm [thread:$0]  %s2780_s18, 128, %s4261_s8, [#allocation5]  }
 0xa85   :  { %3482 = dma.done.wait [#allocation5], 128  }
 0xa86   :  { %3483 = vsyncadd [#allocation5], 4294967168 }
 0xa87   :  { %2786 = vsyncpa [#allocation4], 1 }
 0xa88   :  { %2787 = vsyncpa [#allocation7], 1 }
 0xa89   :  { %2788 = vsyncpa [#allocation10], 1 }
 0xa8a   :  { %2789 = vsyncpa [#allocation5], 1 }

</bundles_post_ra>
